<compile_context>
chip_gen: v6e
topology: v6e:2x2x1
jax: 0.10.0
libtpu: 0.0.40
codegen_flags: <defaults>
</compile_context>

<pallas_src>
import jax
import jax.numpy as jnp
from jax.experimental import pallas as pl
from jax.experimental.pallas import tpu as pltpu


# --------------------------------------------------------------------------
# Fused self-attention kernel (one batch element per grid step)
# --------------------------------------------------------------------------
def _self_attention_kernel(x_ref, wq_ref, bq_ref, wk_ref, bk_ref,
                           wv_ref, bv_ref, wo_ref, bo_ref, gamma_ref, o_ref):
    x = x_ref[0]                                                      # (C, N)

    # 1x1-conv projections: fused matmul + bias. Weights are (out, in).
    q = jax.lax.dot_general(wq_ref[...], x, (((1,), (0,)), ((), ())),
                            preferred_element_type=jnp.float32) + bq_ref[...]   # (d, N)
    k = jax.lax.dot_general(wk_ref[...], x, (((1,), (0,)), ((), ())),
                            preferred_element_type=jnp.float32) + bk_ref[...]   # (d, N)
    v = jax.lax.dot_general(wv_ref[...], x, (((1,), (0,)), ((), ())),
                            preferred_element_type=jnp.float32) + bv_ref[...]   # (C, N)

    # attention logits: s[i, j] = q[:, i] . k[:, j]  (contract the head dim d)
    s = jax.lax.dot_general(q, k, (((0,), (0,)), ((), ())),
                            preferred_element_type=jnp.float32)       # (N, N)

    # softmax over j (lane axis); EUP reciprocal keeps the divide off the VALU.
    m = jnp.max(s, axis=-1, keepdims=True)
    p = jnp.exp(s - m)
    attn = p * pl.reciprocal(jnp.sum(p, axis=-1, keepdims=True), approx=True)

    # out[c, i] = sum_j v[c, j] * attn[i, j]          (torch: value @ attn^T)
    o = jax.lax.dot_general(v, attn, (((1,), (1,)), ((), ())),
                            preferred_element_type=jnp.float32)       # (C, N)

    # out_conv (1x1) + gamma-gated residual.
    y = jax.lax.dot_general(wo_ref[...], o, (((1,), (0,)), ((), ())),
                            preferred_element_type=jnp.float32) + bo_ref[...]   # (C, N)
    o_ref[0] = (gamma_ref[...] * y + x).astype(o_ref.dtype)


def self_attention_forward(params, x):
    """x: (B, C, H, W) float32 -> (B, C, H, W) float32."""
    B, C, H, W = x.shape
    N = H * W
    d = params["wq"].shape[0]
    xf = x.reshape(B, C, N)                       # free reshape, no layout move

    def full(shape):
        ndims = len(shape)
        return pl.BlockSpec(shape, lambda b, _n=ndims: (0,) * _n)

    out = pl.pallas_call(
        _self_attention_kernel,
        out_shape=jax.ShapeDtypeStruct((B, C, N), jnp.float32),
        grid_spec=pltpu.PrefetchScalarGridSpec(
            num_scalar_prefetch=0,
            grid=(B,),
            in_specs=[
                pl.BlockSpec((1, C, N), lambda b: (b, 0, 0)),   # x
                full((d, C)), full((d, 1)),                     # wq, bq
                full((d, C)), full((d, 1)),                     # wk, bk
                full((C, C)), full((C, 1)),                     # wv, bv
                full((C, C)), full((C, 1)),                     # wo, bo
                full((1, 1)),                                   # gamma
            ],
            out_specs=pl.BlockSpec((1, C, N), lambda b: (b, 0, 0)),
        ),
        compiler_params=pltpu.CompilerParams(
            dimension_semantics=("parallel",)),
    )(xf, params["wq"], params["bq"], params["wk"], params["bk"],
      params["wv"], params["bv"], params["wo"], params["bo"], params["gamma"])
    return out.reshape(B, C, H, W)


# --------------------------------------------------------------------------
# Parameters (1x1-conv weights pre-packed as (out, in); deterministic init)
# --------------------------------------------------------------------------
def init_params(key, in_dim):
    d = in_dim // 8
    keys = jax.random.split(key, 8)
    scale = 1.0 / jnp.sqrt(jnp.float32(in_dim))
    return {
        "wq": scale * jax.random.normal(keys[0], (d, in_dim), jnp.float32),
        "bq": 0.1 * jax.random.normal(keys[1], (d, 1), jnp.float32),
        "wk": scale * jax.random.normal(keys[2], (d, in_dim), jnp.float32),
        "bk": 0.1 * jax.random.normal(keys[3], (d, 1), jnp.float32),
        "wv": scale * jax.random.normal(keys[4], (in_dim, in_dim), jnp.float32),
        "bv": 0.1 * jax.random.normal(keys[5], (in_dim, 1), jnp.float32),
        "wo": scale * jax.random.normal(keys[6], (in_dim, in_dim), jnp.float32),
        "bo": 0.1 * jax.random.normal(keys[7], (in_dim, 1), jnp.float32),
        # nn.Parameter(torch.zeros(1)) makes the block an identity at init;
        # use a nonzero deterministic gamma so the test exercises the full path.
        "gamma": jnp.full((1, 1), 0.5, jnp.float32),
    }


# --------------------------------------------------------------------------
# Pure-JAX reference (mirrors the torch forward exactly)
# --------------------------------------------------------------------------
def self_attention_ref(params, x):
    B, C, H, W = x.shape
    N = H * W
    xf = x.reshape(B, C, N)
    q = jnp.einsum('dc,bcn->bdn', params["wq"], xf) + params["bq"][None]
    k = jnp.einsum('dc,bcn->bdn', params["wk"], xf) + params["bk"][None]
    v = jnp.einsum('dc,bcn->bdn', params["wv"], xf) + params["bv"][None]
    attn = jax.nn.softmax(jnp.einsum('bdi,bdj->bij', q, k), axis=-1)
    o = jnp.einsum('bcj,bij->bci', v, attn)
    y = jnp.einsum('dc,bcn->bdn', params["wo"], o) + params["bo"][None]
    return (params["gamma"][0, 0] * y + xf).reshape(B, C, H, W)


if __name__ == "__main__":
    key = jax.random.PRNGKey(0)
    kp, kx = jax.random.split(key)
    B, C, H, W = 2, 32, 16, 16          # in_dim=32 -> attention head dim 4
    params = init_params(kp, C)
    x = jax.random.normal(kx, (B, C, H, W), jnp.float32)

    fwd = jax.jit(self_attention_forward)
    out = jax.block_until_ready(fwd(params, x))
    assert out.shape == (B, C, H, W) and out.dtype == jnp.float32

    ref = self_attention_ref(params, x)
    max_err = float(jnp.max(jnp.abs(out - ref)))
    assert jnp.allclose(out, ref, rtol=2e-2, atol=2e-2), max_err
    print("KERNEL_OK")
</pallas_src>

<mosaic_0001>
module attributes {stable_mosaic.version = 11 : i64} {
  func.func @_self_attention_kernel(%arg0: i32, %arg1: memref<1x32x256xf32, #tpu.memory_space<vmem>>, %arg2: memref<4x32xf32, #tpu.memory_space<vmem>>, %arg3: memref<4x1xf32, #tpu.memory_space<vmem>>, %arg4: memref<4x32xf32, #tpu.memory_space<vmem>>, %arg5: memref<4x1xf32, #tpu.memory_space<vmem>>, %arg6: memref<32x32xf32, #tpu.memory_space<vmem>>, %arg7: memref<32x1xf32, #tpu.memory_space<vmem>>, %arg8: memref<32x32xf32, #tpu.memory_space<vmem>>, %arg9: memref<32x1xf32, #tpu.memory_space<vmem>>, %arg10: memref<1x1xf32, #tpu.memory_space<vmem>>, %arg11: memref<1x32x256xf32, #tpu.memory_space<vmem>>) attributes {dimension_semantics = [#tpu.dimension_semantics<parallel>], iteration_bounds = array<i64: 2>, scalar_prefetch = 0 : i64, scratch_operands = 0 : i64, tpu.core_type = #tpu.core_type<tc>, window_params = [{transform_indices = @transform_0, window_bounds = array<i64: 1, 32, 256>}, {pipeline_mode = #tpu.pipeline_mode<synchronous>, transform_indices = @transform_1, window_bounds = array<i64: 4, 32>}, {pipeline_mode = #tpu.pipeline_mode<synchronous>, transform_indices = @transform_2, window_bounds = array<i64: 4, 1>}, {pipeline_mode = #tpu.pipeline_mode<synchronous>, transform_indices = @transform_3, window_bounds = array<i64: 4, 32>}, {pipeline_mode = #tpu.pipeline_mode<synchronous>, transform_indices = @transform_4, window_bounds = array<i64: 4, 1>}, {pipeline_mode = #tpu.pipeline_mode<synchronous>, transform_indices = @transform_5, window_bounds = array<i64: 32, 32>}, {pipeline_mode = #tpu.pipeline_mode<synchronous>, transform_indices = @transform_6, window_bounds = array<i64: 32, 1>}, {pipeline_mode = #tpu.pipeline_mode<synchronous>, transform_indices = @transform_7, window_bounds = array<i64: 32, 32>}, {pipeline_mode = #tpu.pipeline_mode<synchronous>, transform_indices = @transform_8, window_bounds = array<i64: 32, 1>}, {pipeline_mode = #tpu.pipeline_mode<synchronous>, transform_indices = @transform_9, window_bounds = array<i64: 1, 1>}, {transform_indices = @transform_10, window_bounds = array<i64: 1, 32, 256>}]} {
    %c0 = arith.constant 0 : index
    %c0_0 = arith.constant 0 : index
    %c0_1 = arith.constant 0 : index
    %0 = vector.load %arg1[%c0, %c0_0, %c0_1] : memref<1x32x256xf32, #tpu.memory_space<vmem>>, vector<1x32x256xf32>
    %1 = vector.shape_cast %0 : vector<1x32x256xf32> to vector<32x256xf32>
    %c0_2 = arith.constant 0 : index
    %c0_3 = arith.constant 0 : index
    %2 = vector.load %arg2[%c0_2, %c0_3] : memref<4x32xf32, #tpu.memory_space<vmem>>, vector<4x32xf32>
    %cst = arith.constant dense<0.000000e+00> : vector<4x256xf32>
    %3 = tpu.matmul %2, %1, %cst {dimension_numbers = #tpu.dot_dimension_numbers<[1], [0], [0], [1], [0, 0, 1, 1], [], []>} : vector<4x32xf32>, vector<32x256xf32>, vector<4x256xf32> -> vector<4x256xf32>
    %c0_4 = arith.constant 0 : index
    %c0_5 = arith.constant 0 : index
    %4 = vector.load %arg3[%c0_4, %c0_5] : memref<4x1xf32, #tpu.memory_space<vmem>>, vector<4x1xf32>
    %5 = vector.broadcast %4 : vector<4x1xf32> to vector<4x256xf32>
    %6 = arith.addf %3, %5 : vector<4x256xf32>
    %c0_6 = arith.constant 0 : index
    %c0_7 = arith.constant 0 : index
    %7 = vector.load %arg4[%c0_6, %c0_7] : memref<4x32xf32, #tpu.memory_space<vmem>>, vector<4x32xf32>
    %cst_8 = arith.constant dense<0.000000e+00> : vector<4x256xf32>
    %8 = tpu.matmul %7, %1, %cst_8 {dimension_numbers = #tpu.dot_dimension_numbers<[1], [0], [0], [1], [0, 0, 1, 1], [], []>} : vector<4x32xf32>, vector<32x256xf32>, vector<4x256xf32> -> vector<4x256xf32>
    %c0_9 = arith.constant 0 : index
    %c0_10 = arith.constant 0 : index
    %9 = vector.load %arg5[%c0_9, %c0_10] : memref<4x1xf32, #tpu.memory_space<vmem>>, vector<4x1xf32>
    %10 = vector.broadcast %9 : vector<4x1xf32> to vector<4x256xf32>
    %11 = arith.addf %8, %10 : vector<4x256xf32>
    %c0_11 = arith.constant 0 : index
    %c0_12 = arith.constant 0 : index
    %12 = vector.load %arg6[%c0_11, %c0_12] : memref<32x32xf32, #tpu.memory_space<vmem>>, vector<32x32xf32>
    %cst_13 = arith.constant dense<0.000000e+00> : vector<32x256xf32>
    %13 = tpu.matmul %12, %1, %cst_13 {dimension_numbers = #tpu.dot_dimension_numbers<[1], [0], [0], [1], [0, 0, 1, 1], [], []>} : vector<32x32xf32>, vector<32x256xf32>, vector<32x256xf32> -> vector<32x256xf32>
    %c0_14 = arith.constant 0 : index
    %c0_15 = arith.constant 0 : index
    %14 = vector.load %arg7[%c0_14, %c0_15] : memref<32x1xf32, #tpu.memory_space<vmem>>, vector<32x1xf32>
    %15 = vector.broadcast %14 : vector<32x1xf32> to vector<32x256xf32>
    %16 = arith.addf %13, %15 : vector<32x256xf32>
    %cst_16 = arith.constant dense<0.000000e+00> : vector<256x256xf32>
    %17 = tpu.matmul %6, %11, %cst_16 {dimension_numbers = #tpu.dot_dimension_numbers<[0], [0], [1], [1], [0, 1, 1, 1], [], []>} : vector<4x256xf32>, vector<4x256xf32>, vector<256x256xf32> -> vector<256x256xf32>
    %cst_17 = arith.constant dense<0xFF800000> : vector<256xf32>
    %18 = vector.multi_reduction <maximumf>, %17, %cst_17 [1] : vector<256x256xf32> to vector<256xf32>
    %19 = vector.shape_cast %18 : vector<256xf32> to vector<256x1xf32>
    %20 = vector.broadcast %19 : vector<256x1xf32> to vector<256x256xf32>
    %21 = arith.subf %17, %20 : vector<256x256xf32>
    %22 = math.exp %21 : vector<256x256xf32>
    %cst_18 = arith.constant dense<0.000000e+00> : vector<256xf32>
    %23 = vector.multi_reduction <add>, %22, %cst_18 [1] : vector<256x256xf32> to vector<256xf32>
    %24 = vector.shape_cast %23 : vector<256xf32> to vector<256x1xf32>
    %25 = tpu.reciprocal %24 {approx = true} : vector<256x1xf32> -> vector<256x1xf32>
    %26 = vector.broadcast %25 : vector<256x1xf32> to vector<256x256xf32>
    %27 = arith.mulf %22, %26 : vector<256x256xf32>
    %cst_19 = arith.constant dense<0.000000e+00> : vector<32x256xf32>
    %28 = tpu.matmul %16, %27, %cst_19 {dimension_numbers = #tpu.dot_dimension_numbers<[1], [1], [0], [0], [0, 0, 1, 0], [], []>} : vector<32x256xf32>, vector<256x256xf32>, vector<32x256xf32> -> vector<32x256xf32>
    %c0_20 = arith.constant 0 : index
    %c0_21 = arith.constant 0 : index
    %29 = vector.load %arg8[%c0_20, %c0_21] : memref<32x32xf32, #tpu.memory_space<vmem>>, vector<32x32xf32>
    %cst_22 = arith.constant dense<0.000000e+00> : vector<32x256xf32>
    %30 = tpu.matmul %29, %28, %cst_22 {dimension_numbers = #tpu.dot_dimension_numbers<[1], [0], [0], [1], [0, 0, 1, 1], [], []>} : vector<32x32xf32>, vector<32x256xf32>, vector<32x256xf32> -> vector<32x256xf32>
    %c0_23 = arith.constant 0 : index
    %c0_24 = arith.constant 0 : index
    %31 = vector.load %arg9[%c0_23, %c0_24] : memref<32x1xf32, #tpu.memory_space<vmem>>, vector<32x1xf32>
    %32 = vector.broadcast %31 : vector<32x1xf32> to vector<32x256xf32>
    %33 = arith.addf %30, %32 : vector<32x256xf32>
    %c0_25 = arith.constant 0 : index
    %c0_26 = arith.constant 0 : index
    %34 = vector.load %arg10[%c0_25, %c0_26] : memref<1x1xf32, #tpu.memory_space<vmem>>, vector<1x1xf32>
    %35 = vector.broadcast %34 : vector<1x1xf32> to vector<32x256xf32>
    %36 = arith.mulf %35, %33 : vector<32x256xf32>
    %37 = arith.addf %36, %1 : vector<32x256xf32>
    %c0_27 = arith.constant 0 : index
    %c0_28 = arith.constant 0 : index
    %c0_29 = arith.constant 0 : index
    %38 = vector.load %arg11[%c0_27, %c0_28, %c0_29] : memref<1x32x256xf32, #tpu.memory_space<vmem>>, vector<1x32x256xf32>
    %39 = vector.shape_cast %38 : vector<1x32x256xf32> to vector<32x256xf32>
    %40 = vector.shape_cast %37 : vector<32x256xf32> to vector<1x32x256xf32>
    tpu.vector_store %arg11[%c0_27, %c0_28, %c0_29], %40 {strides = array<i32>} : memref<1x32x256xf32, #tpu.memory_space<vmem>>, vector<1x32x256xf32>,
    return
  }
  func.func @transform_0(%arg0: i32) -> (i32, i32, i32) {
    %c0_i32 = arith.constant 0 : i32
    %c0_i32_0 = arith.constant 0 : i32
    %c0_i32_1 = arith.constant 0 : i32
    return %arg0, %c0_i32, %c0_i32_0 : i32, i32, i32
  }
  func.func @transform_1(%arg0: i32) -> (i32, i32) {
    %c0_i32 = arith.constant 0 : i32
    %c0_i32_0 = arith.constant 0 : i32
    %c0_i32_1 = arith.constant 0 : i32
    return %c0_i32, %c0_i32_0 : i32, i32
  }
  func.func @transform_2(%arg0: i32) -> (i32, i32) {
    %c0_i32 = arith.constant 0 : i32
    %c0_i32_0 = arith.constant 0 : i32
    %c0_i32_1 = arith.constant 0 : i32
    return %c0_i32, %c0_i32_0 : i32, i32
  }
  func.func @transform_3(%arg0: i32) -> (i32, i32) {
    %c0_i32 = arith.constant 0 : i32
    %c0_i32_0 = arith.constant 0 : i32
    %c0_i32_1 = arith.constant 0 : i32
    return %c0_i32, %c0_i32_0 : i32, i32
  }
  func.func @transform_4(%arg0: i32) -> (i32, i32) {
    %c0_i32 = arith.constant 0 : i32
    %c0_i32_0 = arith.constant 0 : i32
    %c0_i32_1 = arith.constant 0 : i32
    return %c0_i32, %c0_i32_0 : i32, i32
  }
  func.func @transform_5(%arg0: i32) -> (i32, i32) {
    %c0_i32 = arith.constant 0 : i32
    %c0_i32_0 = arith.constant 0 : i32
    %c0_i32_1 = arith.constant 0 : i32
    return %c0_i32, %c0_i32_0 : i32, i32
  }
  func.func @transform_6(%arg0: i32) -> (i32, i32) {
    %c0_i32 = arith.constant 0 : i32
    %c0_i32_0 = arith.constant 0 : i32
    %c0_i32_1 = arith.constant 0 : i32
    return %c0_i32, %c0_i32_0 : i32, i32
  }
  func.func @transform_7(%arg0: i32) -> (i32, i32) {
    %c0_i32 = arith.constant 0 : i32
    %c0_i32_0 = arith.constant 0 : i32
    %c0_i32_1 = arith.constant 0 : i32
    return %c0_i32, %c0_i32_0 : i32, i32
  }
  func.func @transform_8(%arg0: i32) -> (i32, i32) {
    %c0_i32 = arith.constant 0 : i32
    %c0_i32_0 = arith.constant 0 : i32
    %c0_i32_1 = arith.constant 0 : i32
    return %c0_i32, %c0_i32_0 : i32, i32
  }
  func.func @transform_9(%arg0: i32) -> (i32, i32) {
    %c0_i32 = arith.constant 0 : i32
    %c0_i32_0 = arith.constant 0 : i32
    %c0_i32_1 = arith.constant 0 : i32
    return %c0_i32, %c0_i32_0 : i32, i32
  }
  func.func @transform_10(%arg0: i32) -> (i32, i32, i32) {
    %c0_i32 = arith.constant 0 : i32
    %c0_i32_0 = arith.constant 0 : i32
    %c0_i32_1 = arith.constant 0 : i32
    return %arg0, %c0_i32, %c0_i32_0 : i32, i32, i32
  }
}

</mosaic_0001>

<bundles_post_ra>
// kernel: self_attention_forward.1
= control target key start
LH: loop header
LB: loop body
LE: loop exit
PB: predicated region body
PF: predicated region fallthrough
CT: control target
= control target key end

     0   :  { %s2212_s15 = smov 0   ;;  %s2926_s0 = inlined_call_operand.vmem [shape: f32[2,32,256], index: 0, kind: input, shape index: {}]   ;;  %s2927_s1 = inlined_call_operand.vmem [shape: f32[4,32], index: 1, kind: input, shape index: {}]   ;;  %s2928_s2 = inlined_call_operand.vmem [shape: f32[4,1], index: 2, kind: input, shape index: {}]   ;;  %s2929_s3 = inlined_call_operand.vmem [shape: f32[4,32], index: 3, kind: input, shape index: {}]   ;;  %s2930_s4 = inlined_call_operand.vmem [shape: f32[4,1], index: 4, kind: input, shape index: {}]   ;;  %s2931_s5 = inlined_call_operand.vmem [shape: f32[32,32], index: 5, kind: input, shape index: {}]   ;;  %s2932_s6 = inlined_call_operand.vmem [shape: f32[32,1], index: 6, kind: input, shape index: {}]   ;;  %s2933_s7 = inlined_call_operand.vmem [shape: f32[32,32], index: 7, kind: input, shape index: {}]   ;;  %s2934_s8 = inlined_call_operand.vmem [shape: f32[32,1], index: 8, kind: input, shape index: {}]   ;;  %s2935_s9 = inlined_call_operand.<no memory space> [shape: f32[1,1], index: 9, kind: input, shape index: {}]   ;;  %s2936_s10 = inlined_call_operand.vmem [shape: f32[2,32,256], index: 10, kind: output, shape index: {}]  }
   0x1   :  { %v15_v0 = vstv %s2935_s9 }
   0x2   :  { %16 = vst [vmem:[#allocation2] sm:$0x1] %v15_v0 }
   0x3 LB: > { %s1874_s16 = sadd.s32 4294967295, %s2150_s15   ;;  %p1878_p0 = scmp.ge.s32.totalorder %s2150_s15, 1  ;;  %s2150_s15 = sphi %s2212_s15, %s22_s15  }
   0x4   : > { %p314_p1 = scmp.lt.s32.totalorder %s2150_s15, 3 }
   0x6   : > { %p315_p2 = pnand %p1878_p0, %p314_p1 }
   0x8   : > { %318 = sbr.rel (%p315_p2) target bundleno = 1541 (0x605), region = 60 }
   0xd   : > { %p352_p3 = scmp.lt.s32.totalorder %s1874_s16, 1  ;;  %v2937_v1 = vmov 0.0   ;;  %v2153_v2 = vmov 0   ;;  %v371_v3 = vld [vmem:[%s2928_s2] sm:$0xf]  ;;  %vm377_vm0 = vcmask 261120  }
   0xe   : > { %445 = vmatprep.mubr.f32.mxu0 %v2937_v1  ;;  %1942 = vset.pattern.permute.xlu0 %v2153_v2  ;;  %v453_v4 = vld [vmem:[%s2930_s4] sm:$0xf]  ;;  %vm823_vm1 = vcmask 1043456   ;;  %vm726_vm2 = vcmask 31744  }
   0xf   : > { %s3030_s16 = smov (!%p352_p3, %s1874_s16), 1  ;;  %374 = vperm.xlu0 %1942, %v371_v3   ;;  %894 = vmatprep.mubr.f32.mxu1 %v2937_v1  ;;  %v370_v13 = vld [vmem:[%s2927_s1] sm:$0xf] }
  0x10   : > { %s1930_s20 = sshll.u32 %s3030_s16, 6  ;;  %v452_v14 = vld [vmem:[%s2929_s3] sm:$0xf] }
  0x11   : > { %s2237_s23 = scalar_lea.vmem %s2926_s0, %s1930_s20  ;;  %s2905_s28 = scalar_lea.vmem %s2936_s10, %s1930_s20 }
  0x12   : > { %v369_v5 = vld [vmem:[%s2237_s23 + $0x38] sm:$0xff]  ;;  %v368_v6 = vld [vmem:[%s2237_s23 + $0x30] sm:$0xff]  ;;  %v367_v7 = vld [vmem:[%s2237_s23 + $0x28] sm:$0xff] }
  0x13   : > { %456 = vperm.xlu0 %1942, %v453_v4   ;;  %405 = vmatprep.subr.mxu0 %v369_v5  ;;  %v366_v8 = vld [vmem:[%s2237_s23 + $0x20] sm:$0xff]  ;;  %v365_v9 = vld [vmem:[%s2237_s23 + $0x18] sm:$0xff]  ;;  %v364_v10 = vld [vmem:[%s2237_s23 + $0x10] sm:$0xff] }
  0x14   : > { %406 = vmatpush1.msra.mxu0 %v368_v6  ;;  %v363_v11 = vld [vmem:[%s2237_s23 + $0x8] sm:$0xff]  ;;  %v362_v12 = vld [vmem:[%s2237_s23] sm:$0xff] }
  0x15   : > { %407 = vmatprep.subr.mxu0 %v367_v7 }
  0x16   : > { %408 = vmatpush1.msra.mxu0 %v366_v8 }
  0x17   : > { %409 = vmatprep.subr.mxu0 %v365_v9 }
  0x18   : > { %410 = vmatpush1.msra.mxu0 %v364_v10 }
  0x19   : > { %411 = vmatprep.subr.mxu0 %v363_v11 }
  0x1a   : > { %412 = vmatpush1.msra.mxu0 %v362_v12 }
  0x1b   : > { %1883 = vmatmul.mubr.msk.f32.vlgmr.msra.gmra.mxu0 %vm377_vm0, %v370_v13  ;;  %486 = vmatprep.subr.mxu0 %v369_v5 }
  0x1c   : > { %487 = vmatpush1.msra.mxu0 %v368_v6  ;;  %526 = vmatprep.mubr.f32.mxu0 %v2937_v1 }
  0x1d   : > { %488 = vmatprep.subr.mxu0 %v367_v7 }
  0x1e   : > { %489 = vmatpush1.msra.mxu0 %v366_v8 }
  0x1f   : > { %490 = vmatprep.subr.mxu0 %v365_v9 }
  0x20   : > { %491 = vmatpush1.msra.mxu0 %v364_v10 }
  0x21   : > { %492 = vmatprep.subr.mxu0 %v363_v11 }
  0x22   : > { %493 = vmatpush1.msra.mxu0 %v362_v12 }
  0x23   : > { %1884 = vmatmul.mubr.msk.f32.vlgmr.msra.gmra.mxu0 %vm377_vm0, %v452_v14  ;;  %597 = vmatprep.subr.mxu0 %v369_v5 }
  0x24   : > { %598 = vmatpush1.msra.mxu0 %v368_v6  ;;  %637 = vmatprep.mubr.f32.mxu0 %v2937_v1 }
  0x25   : > { %599 = vmatprep.subr.mxu0 %v367_v7 }
  0x26   : > { %600 = vmatpush1.msra.mxu0 %v366_v8 }
  0x27   : > { %601 = vmatprep.subr.mxu0 %v365_v9 }
  0x28   : > { %602 = vmatpush1.msra.mxu0 %v364_v10 }
  0x29   : > { %603 = vmatprep.subr.mxu0 %v363_v11 }
  0x2a   : > { %604 = vmatpush1.msra.mxu0 %v362_v12 }
  0x8a   : > { %v375_v15 = vpop.permute.xlu0 %374 }
  0x8e   : > { %v457_v20 = vpop.permute.xlu0 %456 }
  0xdb   : > { %v447_v16 = vpop.f32.mrf.mxu0 }
  0xdc   : > { %v448_v17 = vadd.f32 %v447_v16, %v375_v15 }
  0xdd   : > { %v449_v18 = vpop.f32.mrf.mxu0 }
  0xde   : > { %662 = vxpose.xlu1.b32.start.end [1/1] (short) %v448_v17, 128  ;;  %v450_v24 = vadd.f32 %v449_v18, %v375_v15 }
  0xe3   : > { %v528_v19 = vpop.f32.mrf.mxu0 }
  0xe4   : > { %v529_v23 = vadd.f32 %v528_v19, %v457_v20 }
  0xe5   : > { %v530_v21 = vpop.f32.mrf.mxu0 }
  0xe6   : > { %v531_v22 = vadd.f32 %v530_v21, %v457_v20 }
  0xe8   : > { %1889 = vmatprep.subr.msk.mxu1 %vm823_vm1, %v531_v22 }
  0xe9   : > { %1890 = vmatpush1.msk.msra.mxu1 %vm823_vm1, %v529_v23 }
 0x11b   : > { %694 = vxpose.xlu1.b32.start.end [1/1] (short) %v450_v24, 128 }
 0x139   : > { %1943 = vset.pattern.permute.xlu1 %v2153_v2 }
 0x15a   : > { %v678_v25 = vpop.trf.xlu1 }
 0x15b   : > { %1891 = vmatmul.mubr.msk.f32.vlgmr.msra.gmra.mxu1 %vm726_vm2, %v678_v25 }
 0x15c   : > { %900 = vmatprep.mubr.f32.mxu1 %v2937_v1 }
 0x15e   : > { %v679_v26 = vpop.trf.xlu1 }
 0x15f   : > { %1892 = vmatmul.mubr.msk.f32.gmra.mxu1 %vm726_vm2, %v679_v26 }
 0x160   : > { %906 = vmatprep.mubr.f32.mxu1 %v2937_v1 }
 0x162   : > { %v680_v27 = vpop.trf.xlu1 }
 0x163   : > { %1893 = vmatmul.mubr.msk.f32.gmra.mxu1 %vm726_vm2, %v680_v27 }
 0x164   : > { %912 = vmatprep.mubr.f32.mxu1 %v2937_v1 }
 0x166   : > { %v681_v28 = vpop.trf.xlu1 }
 0x167   : > { %1894 = vmatmul.mubr.msk.f32.gmra.mxu1 %vm726_vm2, %v681_v28 }
 0x168   : > { %918 = vmatprep.mubr.f32.mxu1 %v2937_v1 }
 0x16a   : > { %v682_v29 = vpop.trf.xlu1 }
 0x16b   : > { %1895 = vmatmul.mubr.msk.f32.gmra.mxu1 %vm726_vm2, %v682_v29 }
 0x16c   : > { %924 = vmatprep.mubr.f32.mxu1 %v2937_v1 }
 0x16e   : > { %v683_v30 = vpop.trf.xlu1 }
 0x16f   : > { %1896 = vmatmul.mubr.msk.f32.gmra.mxu1 %vm726_vm2, %v683_v30 }
 0x170   : > { %930 = vmatprep.mubr.f32.mxu1 %v2937_v1 }
 0x172   : > { %v684_v31 = vpop.trf.xlu1 }
 0x173   : > { %1897 = vmatmul.mubr.msk.f32.gmra.mxu1 %vm726_vm2, %v684_v31 }
 0x174   : > { %936 = vmatprep.mubr.f32.mxu1 %v2937_v1 }
 0x176   : > { %v685_v32 = vpop.trf.xlu1 }
 0x177   : > { %1898 = vmatmul.mubr.msk.f32.gmra.mxu1 %vm726_vm2, %v685_v32 }
 0x178   : > { %942 = vmatprep.mubr.f32.mxu1 %v2937_v1 }
 0x17a   : > { %v686_v33 = vpop.trf.xlu1 }
 0x17b   : > { %1899 = vmatmul.mubr.msk.f32.gmra.mxu1 %vm726_vm2, %v686_v33 }
 0x17c   : > { %948 = vmatprep.mubr.f32.mxu1 %v2937_v1 }
 0x17e   : > { %v687_v34 = vpop.trf.xlu1 }
 0x17f   : > { %1900 = vmatmul.mubr.msk.f32.gmra.mxu1 %vm726_vm2, %v687_v34 }
 0x180   : > { %954 = vmatprep.mubr.f32.mxu1 %v2937_v1 }
 0x182   : > { %v688_v35 = vpop.trf.xlu1 }
 0x183   : > { %1901 = vmatmul.mubr.msk.f32.gmra.mxu1 %vm726_vm2, %v688_v35 }
 0x184   : > { %960 = vmatprep.mubr.f32.mxu1 %v2937_v1 }
 0x186   : > { %v689_v36 = vpop.trf.xlu1 }
 0x187   : > { %1902 = vmatmul.mubr.msk.f32.gmra.mxu1 %vm726_vm2, %v689_v36 }
 0x188   : > { %966 = vmatprep.mubr.f32.mxu1 %v2937_v1 }
 0x18a   : > { %v690_v37 = vpop.trf.xlu1 }
 0x18b   : > { %1903 = vmatmul.mubr.msk.f32.gmra.mxu1 %vm726_vm2, %v690_v37 }
 0x18c   : > { %972 = vmatprep.mubr.f32.mxu1 %v2937_v1 }
 0x18e   : > { %v691_v38 = vpop.trf.xlu1 }
 0x18f   : > { %1904 = vmatmul.mubr.msk.f32.gmra.mxu1 %vm726_vm2, %v691_v38 }
 0x190   : > { %978 = vmatprep.mubr.f32.mxu1 %v2937_v1 }
 0x192   : > { %v692_v39 = vpop.trf.xlu1 }
 0x193   : > { %1905 = vmatmul.mubr.msk.f32.gmra.mxu1 %vm726_vm2, %v692_v39 }
 0x194   : > { %984 = vmatprep.mubr.f32.mxu1 %v2937_v1 }
 0x196   : > { %v693_v40 = vpop.trf.xlu1 }
 0x197   : > { %1906 = vmatmul.mubr.msk.f32.gmra.mxu1 %vm726_vm2, %v693_v40 }
 0x198   : > { %990 = vmatprep.mubr.f32.mxu1 %v2937_v1 }
 0x19a   : > { %v710_v41 = vpop.trf.xlu1 }
 0x19b   : > { %1907 = vmatmul.mubr.msk.f32.gmra.mxu1 %vm726_vm2, %v710_v41 }
 0x19c   : > { %996 = vmatprep.mubr.f32.mxu1 %v2937_v1 }
 0x19e   : > { %v711_v42 = vpop.trf.xlu1 }
 0x19f   : > { %1908 = vmatmul.mubr.msk.f32.gmra.mxu1 %vm726_vm2, %v711_v42 }
 0x1a0   : > { %1002 = vmatprep.mubr.f32.mxu1 %v2937_v1 }
 0x1a2   : > { %v712_v43 = vpop.trf.xlu1 }
 0x1a3   : > { %1909 = vmatmul.mubr.msk.f32.gmra.mxu1 %vm726_vm2, %v712_v43 }
 0x1a4   : > { %1008 = vmatprep.mubr.f32.mxu1 %v2937_v1 }
 0x1a6   : > { %v713_v44 = vpop.trf.xlu1 }
 0x1a7   : > { %1910 = vmatmul.mubr.msk.f32.gmra.mxu1 %vm726_vm2, %v713_v44 }
 0x1a8   : > { %1014 = vmatprep.mubr.f32.mxu1 %v2937_v1 }
 0x1aa   : > { %v714_v45 = vpop.trf.xlu1 }
 0x1ab   : > { %1911 = vmatmul.mubr.msk.f32.gmra.mxu1 %vm726_vm2, %v714_v45 }
 0x1ac   : > { %1020 = vmatprep.mubr.f32.mxu1 %v2937_v1 }
 0x1ae   : > { %v715_v46 = vpop.trf.xlu1 }
 0x1af   : > { %1912 = vmatmul.mubr.msk.f32.gmra.mxu1 %vm726_vm2, %v715_v46 }
 0x1b0   : > { %1026 = vmatprep.mubr.f32.mxu1 %v2937_v1 }
 0x1b2   : > { %v716_v47 = vpop.trf.xlu1 }
 0x1b3   : > { %1913 = vmatmul.mubr.msk.f32.gmra.mxu1 %vm726_vm2, %v716_v47 }
 0x1b4   : > { %1032 = vmatprep.mubr.f32.mxu1 %v2937_v1 }
 0x1b6   : > { %v717_v48 = vpop.trf.xlu1 }
 0x1b7   : > { %1914 = vmatmul.mubr.msk.f32.gmra.mxu1 %vm726_vm2, %v717_v48 }
 0x1b8   : > { %1038 = vmatprep.mubr.f32.mxu1 %v2937_v1 }
 0x1ba   : > { %v718_v49 = vpop.trf.xlu1 }
 0x1bb   : > { %1915 = vmatmul.mubr.msk.f32.gmra.mxu1 %vm726_vm2, %v718_v49 }
 0x1bc   : > { %1044 = vmatprep.mubr.f32.mxu1 %v2937_v1 }
 0x1be   : > { %v719_v50 = vpop.trf.xlu1 }
 0x1bf   : > { %1916 = vmatmul.mubr.msk.f32.gmra.mxu1 %vm726_vm2, %v719_v50 }
 0x1c0   : > { %1050 = vmatprep.mubr.f32.mxu1 %v2937_v1 }
 0x1c2   : > { %v720_v51 = vpop.trf.xlu1 }
 0x1c3   : > { %1917 = vmatmul.mubr.msk.f32.gmra.mxu1 %vm726_vm2, %v720_v51 }
 0x1c4   : > { %1056 = vmatprep.mubr.f32.mxu1 %v2937_v1 }
 0x1c6   : > { %v721_v52 = vpop.trf.xlu1 }
 0x1c7   : > { %1918 = vmatmul.mubr.msk.f32.gmra.mxu1 %vm726_vm2, %v721_v52 }
 0x1c8   : > { %1062 = vmatprep.mubr.f32.mxu1 %v2937_v1 }
 0x1ca   : > { %v722_v53 = vpop.trf.xlu1 }
 0x1cb   : > { %1919 = vmatmul.mubr.msk.f32.gmra.mxu1 %vm726_vm2, %v722_v53 }
 0x1cc   : > { %1068 = vmatprep.mubr.f32.mxu1 %v2937_v1 }
 0x1ce   : > { %v723_v54 = vpop.trf.xlu1 }
 0x1cf   : > { %1920 = vmatmul.mubr.msk.f32.gmra.mxu1 %vm726_vm2, %v723_v54 }
 0x1d0   : > { %1074 = vmatprep.mubr.f32.mxu1 %v2937_v1 }
 0x1d2   : > { %v724_v55 = vpop.trf.xlu1 }
 0x1d3   : > { %1921 = vmatmul.mubr.msk.f32.gmra.mxu1 %vm726_vm2, %v724_v55 }
 0x1d4   : > { %1080 = vmatprep.mubr.f32.mxu1 %v2937_v1 }
 0x1d6   : > { %v725_v56 = vpop.trf.xlu1 }
 0x1d7   : > { %1922 = vmatmul.mubr.msk.f32.gmra.mxu1 %vm726_vm2, %v725_v56 }
 0x21b   : > { %v2321_v57 = vpop.f32.mrf.mxu1 }
 0x21d   : > { %v2323_v58 = vpop.f32.mrf.mxu1 }
 0x21f   : > { %v2325_v59 = vpop.f32.mrf.mxu1 }
 0x221   : > { %v2327_v60 = vpop.f32.mrf.mxu1 }
 0x223   : > { %v2329_v61 = vpop.f32.mrf.mxu1 }
 0x225   : > { %v2331_v62 = vpop.f32.mrf.mxu1 }
 0x227   : > { %v2333_v63 = vpop.f32.mrf.mxu1 }
 0x229   : > { %v2335_v0 = vpop.f32.mrf.mxu1 }
 0x22a   : > { %v1096_v56 = vmax.f32 %v2333_v63, %v2335_v0 }
 0x22b   : > { %v2337_v2 = vpop.f32.mrf.mxu1 }
 0x22d   : > { %v2339_v3 = vpop.f32.mrf.mxu1 }
 0x22e   : > { %v1099_v52 = vmax.f32 %v2337_v2, %v2339_v3 }
 0x22f   : > { %v2341_v4 = vpop.f32.mrf.mxu1 }
 0x231   : > { %v2343_v5 = vpop.f32.mrf.mxu1 }
 0x232   : > { %v1102_v48 = vmax.f32 %v2341_v4, %v2343_v5 }
 0x233   : > { %v2345_v6 = vpop.f32.mrf.mxu1 }
 0x235   : > { %v2347_v7 = vpop.f32.mrf.mxu1 }
 0x236   : > { %v1105_v43 = vmax.f32 %v2345_v6, %v2347_v7 }
 0x237   : > { %v2349_v8 = vpop.f32.mrf.mxu1 }
 0x239   : > { %v2351_v9 = vpop.f32.mrf.mxu1 }
 0x23a   : > { %v1108_v10 = vmax.f32 %v2349_v8, %v2351_v9 }
 0x23b   : > { %v2355_v11 = vpop.f32.mrf.mxu1 }
 0x23c   : > { %1109 = vmax.xlane.f32.xlu1 %v1108_v10 }
 0x23d   : > { %v2357_v12 = vpop.f32.mrf.mxu1 }
 0x23e   : > { %v1111_v40 = vmax.f32 %v2355_v11, %v2357_v12 }
 0x23f   : > { %v2359_v13 = vpop.f32.mrf.mxu1 }
 0x241   : > { %v2361_v14 = vpop.f32.mrf.mxu1 }
 0x242   : > { %v1114_v37 = vmax.f32 %v2359_v13, %v2361_v14 }
 0x243   : > { %v2363_v15 = vpop.f32.mrf.mxu1 }
 0x245   : > { %v2365_v16 = vpop.f32.mrf.mxu1 }
 0x246   : > { %v1117_v34 = vmax.f32 %v2363_v15, %v2365_v16 }
 0x247   : > { %v2367_v17 = vpop.f32.mrf.mxu1 }
 0x249   : > { %v2369_v18 = vpop.f32.mrf.mxu1 }
 0x24a   : > { %v1120_v19 = vmax.f32 %v2367_v17, %v2369_v18 }
 0x24b   : > { %v2373_v20 = vpop.f32.mrf.mxu1 }
 0x24c   : > { %1121 = vmax.xlane.f32.xlu0 %v1120_v19 }
 0x24d   : > { %v2375_v21 = vpop.f32.mrf.mxu1 }
 0x24e   : > { %v1123_v22 = vmax.f32 %v2373_v20, %v2375_v21 }
 0x24f   : > { %v2379_v23 = vpop.f32.mrf.mxu1 }
 0x250   : > { %1124 = vmax.xlane.f32.xlu0 %v1123_v22  ;;  %v1093_v22 = vmax.f32 %v2329_v61, %v2331_v62 }
 0x251   : > { %v2381_v24 = vpop.f32.mrf.mxu1 }
 0x252   : > { %v1126_v25 = vmax.f32 %v2379_v23, %v2381_v24 }
 0x253   : > { %v2385_v26 = vpop.f32.mrf.mxu1 }
 0x254   : > { %1127 = vmax.xlane.f32.xlu0 %v1126_v25 }
 0x255   : > { %v2387_v27 = vpop.f32.mrf.mxu1 }
 0x256   : > { %v1129_v28 = vmax.f32 %v2385_v26, %v2387_v27 }
 0x257   : > { %v2391_v29 = vpop.f32.mrf.mxu1 }
 0x258   : > { %1130 = vmax.xlane.f32.xlu0 %v1129_v28 }
 0x259   : > { %v2393_v30 = vpop.f32.mrf.mxu1 }
 0x25a   : > { %v1132_v31 = vmax.f32 %v2391_v29, %v2393_v30 }
 0x25b   : > { %v2397_v32 = vpop.f32.mrf.mxu1 }
 0x25c   : > { %2969 = vst [vmem:[#allocation3_spill] sm:$0xff] %v2397_v32  ;;  %1133 = vmax.xlane.f32.xlu0 %v1132_v31  ;;  %v1090_v31 = vmax.f32 %v2325_v59, %v2327_v60 }
 0x25d   : > { %v2399_v33 = vpop.f32.mrf.mxu1 }
 0x25e   : > { %2970 = vst [vmem:[#allocation4_spill] sm:$0xff] %v2399_v33  ;;  %v1135_v54 = vmax.f32 %v2397_v32, %v2399_v33 }
 0x25f   : > { %v2403_v35 = vpop.f32.mrf.mxu1 }
 0x260   : > { %2971 = vst [vmem:[#allocation5_spill] sm:$0xff] %v2403_v35  ;;  %1118 = vmax.xlane.f32.xlu0 %v1117_v34 }
 0x261   : > { %v2405_v36 = vpop.f32.mrf.mxu1 }
 0x262   : > { %2972 = vst [vmem:[#allocation6_spill] sm:$0xff] %v2405_v36  ;;  %v1138_v50 = vmax.f32 %v2403_v35, %v2405_v36 }
 0x263   : > { %v2409_v38 = vpop.f32.mrf.mxu1 }
 0x264   : > { %2973 = vst [vmem:[#allocation7_spill] sm:$0xff] %v2409_v38  ;;  %1115 = vmax.xlane.f32.xlu0 %v1114_v37 }
 0x265   : > { %v2411_v39 = vpop.f32.mrf.mxu1 }
 0x266   : > { %2974 = vst [vmem:[#allocation8_spill] sm:$0xff] %v2411_v39  ;;  %v1141_v46 = vmax.f32 %v2409_v38, %v2411_v39  ;;  %v2985_v38 = vmov 0.0  }
 0x267   : > { %v2415_v41 = vpop.f32.mrf.mxu1 }
 0x268   : > { %2975 = vst [vmem:[#allocation9_spill] sm:$0xff] %v2415_v41  ;;  %1112 = vmax.xlane.f32.xlu0 %v1111_v40  ;;  %v1087_v40 = vmax.f32 %v2321_v57, %v2323_v58 }
 0x269   : > { %v2417_v42 = vpop.f32.mrf.mxu1 }
 0x26a   : > { %2976 = vst [vmem:[#allocation10_spill] sm:$0xff] %v2417_v42  ;;  %v1144_v44 = vmax.f32 %v2415_v41, %v2417_v42 }
 0x26b   : > { %v2423_v45 = vpop.f32.mrf.mxu1 }
 0x26c   : > { %1106 = vmax.xlane.f32.xlu0 %v1105_v43  ;;  %1145 = vmax.xlane.f32.xlu1 %v1144_v44 }
 0x26d   : > { %v2427_v47 = vpop.f32.mrf.mxu1 }
 0x26f   : > { %v2431_v49 = vpop.f32.mrf.mxu1 }
 0x270   : > { %1103 = vmax.xlane.f32.xlu0 %v1102_v48  ;;  %1142 = vmax.xlane.f32.xlu1 %v1141_v46 }
 0x271   : > { %v2435_v51 = vpop.f32.mrf.mxu1 }
 0x273   : > { %v2439_v53 = vpop.f32.mrf.mxu1 }
 0x274   : > { %2977 = vst [vmem:[#allocation11_spill] sm:$0xff] %v2439_v53  ;;  %1100 = vmax.xlane.f32.xlu0 %v1099_v52  ;;  %1139 = vmax.xlane.f32.xlu1 %v1138_v50 }
 0x275   : > { %v2443_v55 = vpop.f32.mrf.mxu1 }
 0x276   : > { %2978 = vst [vmem:[#allocation12_spill] sm:$0xff] %v2443_v55 }
 0x277   : > { %v2447_v10 = vpop.f32.mrf.mxu1 }
 0x278   : > { %2979 = vst [vmem:[#allocation13_spill] sm:$0xff] %v2447_v10  ;;  %1097 = vmax.xlane.f32.xlu0 %v1096_v56  ;;  %1136 = vmax.xlane.f32.xlu1 %v1135_v54 }
 0x279   : > { %v2449_v19 = vpop.f32.mrf.mxu1 }
 0x27a   : > { %2980 = vst [vmem:[#allocation14_spill] sm:$0xff] %v2449_v19  ;;  %v1156_v35 = vmax.f32 %v2447_v10, %v2449_v19 }
 0x27b   : > { %v2453_v25 = vpop.f32.mrf.mxu1 }
 0x27c   : > { %2981 = vst [vmem:[#allocation15_spill] sm:$0xff] %v2453_v25  ;;  %1094 = vmax.xlane.f32.xlu0 %v1093_v22 }
 0x27d   : > { %v2455_v28 = vpop.f32.mrf.mxu1 }
 0x27e   : > { %2982 = vst [vmem:[#allocation16_spill] sm:$0xff] %v2455_v28 }
 0x27f   : > { %v2459_v34 = vpop.f32.mrf.mxu1 }
 0x280   : > { %2983 = vst [vmem:[#allocation17_spill] sm:$0xff] %v2459_v34  ;;  %1091 = vmax.xlane.f32.xlu0 %v1090_v31 }
 0x281   : > { %v2461_v37 = vpop.f32.mrf.mxu1 }
 0x282   : > { %2984 = vst [vmem:[#allocation18_spill] sm:$0xff] %v2461_v37  ;;  %v1162_v36 = vmax.f32 %v2459_v34, %v2461_v37 }
 0x283   : > { %v2465_v43 = vpop.f32.mrf.mxu1 }
 0x284   : > { %1088 = vmax.xlane.f32.xlu0 %v1087_v40 }
 0x285   : > { %v2467_v44 = vpop.f32.mrf.mxu1 }
 0x286   : > { %v1165_v46 = vmax.f32 %v2465_v43, %v2467_v44 }
 0x287   : > { %v2471_v48 = vpop.f32.mrf.mxu1 }
 0x288   : > { %1166 = vmax.xlane.f32.xlu0 %v1165_v46 }
 0x289   : > { %v2473_v50 = vpop.f32.mrf.mxu1 }
 0x28a   : > { %v1168_v52 = vmax.f32 %v2471_v48, %v2473_v50 }
 0x28b   : > { %v2477_v54 = vpop.f32.mrf.mxu1 }
 0x28c   : > { %1169 = vmax.xlane.f32.xlu0 %v1168_v52 }
 0x28d   : > { %v2479_v56 = vpop.f32.mrf.mxu1 }
 0x28e   : > { %v1171_v22 = vmax.f32 %v2477_v54, %v2479_v56 }
 0x28f   : > { %v2483_v31 = vpop.f32.mrf.mxu1 }
 0x290   : > { %1172 = vmax.xlane.f32.xlu0 %v1171_v22 }
 0x291   : > { %v2485_v40 = vpop.f32.mrf.mxu1 }
 0x292   : > { %v1174_v46 = vmax.f32 %v2483_v31, %v2485_v40 }
 0x293   : > { %v2489_v1 = vpop.f32.mrf.mxu1 }
 0x294   : > { %1175 = vmax.xlane.f32.xlu0 %v1174_v46  ;;  %v1159_v46 = vmax.f32 %v2453_v25, %v2455_v28 }
 0x295   : > { %v2491_v33 = vpop.f32.mrf.mxu1 }
 0x296   : > { %v1177_v52 = vmax.f32 %v2489_v1, %v2491_v33 }
 0x297   : > { %v2495_v32 = vpop.f32.mrf.mxu1 }
 0x298   : > { %1178 = vmax.xlane.f32.xlu0 %v1177_v52  ;;  %v1153_v52 = vmax.f32 %v2439_v53, %v2443_v55 }
 0x299   : > { %v2497_v39 = vpop.f32.mrf.mxu1 }
 0x29a   : > { %v1180_v22 = vmax.f32 %v2495_v32, %v2497_v39 }
 0x29c   : > { %1181 = vmax.xlane.f32.xlu0 %v1180_v22  ;;  %v533_v22 = vld [vmem:[%s2931_s5] sm:$0xff] }
 0x29d   : > { %1885 = vmatmul.mubr.msk.f32.vlgmr.msra.gmra.mxu0 %vm377_vm0, %v533_v22 }
 0x29e   : > { %643 = vmatprep.mubr.f32.mxu0 %v2985_v38 }
 0x2a0   : > { %1163 = vmax.xlane.f32.xlu0 %v1162_v36 }
 0x2a4   : > { %1160 = vmax.xlane.f32.xlu0 %v1159_v46 }
 0x2a8   : > { %1157 = vmax.xlane.f32.xlu0 %v1156_v35 }
 0x2ac   : > { %1154 = vmax.xlane.f32.xlu0 %v1153_v52 }
 0x2d5   : > { %v1122_v36 = vpop.xlane.xlu0 %1121 }
 0x2d9   : > { %v1125_v42 = vpop.xlane.xlu0 %1124 }
 0x2da   : > { %v1207_v22 = vsub.f32 %v2373_v20, %v1125_v42  ;;  %v1208_v37 = vsub.f32 %v2375_v21, %v1125_v42  ;;  %v1205_v20 = vsub.f32 %v2367_v17, %v1122_v36 }
 0x2dd   : > { %v1128_v41 = vpop.xlane.xlu0 %1127 }
 0x2de   : > { %v1209_v46 = vsub.f32 %v2379_v23, %v1128_v41  ;;  %v1210_v19 = vsub.f32 %v2381_v24, %v1128_v41  ;;  %v1295_v41 = vmul.f32 1.442695, %v1207_v22 }
 0x2e0   : > { %v1299_v35 = vmul.f32 1.442695, %v1209_v46  ;;  %v1301_v10 = vmul.f32 1.442695, %v1210_v19 }
 0x2e1   : > { %v1131_v28 = vpop.xlane.xlu0 %1130 }
 0x2e2   : > { %1944 = vpow2.f32 %v1299_v35  ;;  %v1211_v52 = vsub.f32 %v2385_v26, %v1131_v28  ;;  %v1212_v55 = vsub.f32 %v2387_v27, %v1131_v28  ;;  %v1297_v26 = vmul.f32 1.442695, %v1208_v37 }
 0x2e3   : > { %1946 = vpow2.f32 %v1301_v10  ;;  %v1206_v27 = vsub.f32 %v2369_v18, %v1122_v36 }
 0x2e4   : > { %v1303_v53 = vmul.f32 1.442695, %v1211_v52  ;;  %v1305_v25 = vmul.f32 1.442695, %v1212_v55 }
 0x2e5   : > { %v1134_v34 = vpop.xlane.xlu0 %1133 }
 0x2e6   : > { %1948 = vpow2.f32 %v1303_v53  ;;  %v1213_v23 = vsub.f32 %v2391_v29, %v1134_v34  ;;  %v1214_v24 = vsub.f32 %v2393_v30, %v1134_v34  ;;  %v1291_v30 = vmul.f32 1.442695, %v1205_v20 }
 0x2e7   : > { %1950 = vpow2.f32 %v1305_v25  ;;  %v1293_v53 = vmul.f32 1.442695, %v1206_v27 }
 0x2e8   : > { %v1307_v19 = vmul.f32 1.442695, %v1213_v23  ;;  %v1309_v46 = vmul.f32 1.442695, %v1214_v24 }
 0x2e9   : > { %v1119_v35 = vpop.xlane.xlu0 %1118 }
 0x2ea   : > { %1952 = vpow2.f32 %v1307_v19  ;;  %v1203_v28 = vsub.f32 %v2363_v15, %v1119_v35  ;;  %v1204_v18 = vsub.f32 %v2365_v16, %v1119_v35 }
 0x2eb   : > { %1954 = vpow2.f32 %v1309_v46 }
 0x2ec   : > { %1956 = vpow2.f32 %v1295_v41  ;;  %v1287_v52 = vmul.f32 1.442695, %v1203_v28  ;;  %v1289_v24 = vmul.f32 1.442695, %v1204_v18 }
 0x2ed   : > { %1958 = vpow2.f32 %v1297_v26  ;;  %v1116_v21 = vpop.xlane.xlu0 %1115 }
 0x2ee   : > { %1960 = vpow2.f32 %v1291_v30  ;;  %v1201_v23 = vsub.f32 %v2359_v13, %v1116_v21  ;;  %v1202_v41 = vsub.f32 %v2361_v14, %v1116_v21 }
 0x2ef   : > { %v2524_v42 = vpop.eup %1944  ;;  %1962 = vpow2.f32 %v1293_v53  ;;  %v1110_v53 = vpop.xlane.xlu1 %1109 }
 0x2f0   : > { %v2526_v29 = vpop.eup %1946  ;;  %1964 = vpow2.f32 %v1287_v52  ;;  %v1283_v20 = vmul.f32 1.442695, %v1201_v23  ;;  %v1285_v14 = vmul.f32 1.442695, %v1202_v41  ;;  %v1150_v52 = vmax.f32 %v2431_v49, %v2435_v51 }
 0x2f1   : > { %v1113_v55 = vpop.xlane.xlu0 %1112  ;;  %v1414_v10 = vadd.f32 %v2526_v29, %v2524_v42  ;;  %1966 = vpow2.f32 %v1289_v24 }
 0x2f2   : > { %v1199_v13 = vsub.f32 %v2355_v11, %v1113_v55  ;;  %v1200_v21 = vsub.f32 %v2357_v12, %v1113_v55  ;;  %v1198_v55 = vsub.f32 %v2351_v9, %v1110_v53 }
 0x2f3   : > { %v2530_v25 = vpop.eup %1948  ;;  %1415 = vadd.xlane.f32.xlu0 %v1414_v10 }
 0x2f4   : > { %v2533_v17 = vpop.eup %1950  ;;  %v1279_v11 = vmul.f32 1.442695, %v1199_v13  ;;  %v1281_v18 = vmul.f32 1.442695, %v1200_v21 }
 0x2f5   : > { %v1107_v34 = vpop.xlane.xlu0 %1106  ;;  %v1417_v37 = vadd.f32 %v2533_v17, %v2530_v25 }
 0x2f6   : > { %v1195_v24 = vsub.f32 %v2345_v6, %v1107_v34 }
 0x2f7   : > { %v2538_v36 = vpop.eup %1952  ;;  %1418 = vadd.xlane.f32.xlu0 %v1417_v37 }
 0x2f8   : > { %v2540_v22 = vpop.eup %1954 }
 0x2f9   : > { %v2543_v15 = vpop.eup %1956  ;;  %v1104_v19 = vpop.xlane.xlu0 %1103  ;;  %v1420_v16 = vadd.f32 %v2540_v22, %v2538_v36 }
 0x2fa   : > { %v2548_v46 = vpop.eup %1958  ;;  %v1193_v26 = vsub.f32 %v2341_v4, %v1104_v19  ;;  %v1194_v35 = vsub.f32 %v2343_v5, %v1104_v19  ;;  %v534_v4 = vld [vmem:[%s2931_s5 + $0x8] sm:$0xff]  ;;  %v1197_v5 = vsub.f32 %v2349_v8, %v1110_v53  ;;  %v1196_v19 = vsub.f32 %v2347_v7, %v1107_v34 }
 0x2fb   : > { %1421 = vadd.xlane.f32.xlu0 %v1420_v16  ;;  %v1411_v28 = vadd.f32 %v2548_v46, %v2543_v15  ;;  %1886 = vmatmul.mubr.msk.f32.gmra.mxu0 %vm377_vm0, %v534_v4  ;;  %v2562_v12 = vpop.eup %1960 }
 0x2fc   : > { %v1267_v27 = vmul.f32 1.442695, %v1193_v26  ;;  %v1269_v30 = vmul.f32 1.442695, %v1194_v35  ;;  %649 = vmatprep.mubr.f32.mxu0 %v2985_v38  ;;  %v2567_v23 = vpop.eup %1962  ;;  %v1275_v16 = vmul.f32 1.442695, %v1197_v5 }
 0x2fd   : > { %v1101_v10 = vpop.xlane.xlu0 %1100  ;;  %v1277_v35 = vmul.f32 1.442695, %v1198_v55  ;;  %v1408_v13 = vadd.f32 %v2567_v23, %v2562_v12  ;;  %v1273_v6 = vmul.f32 1.442695, %v1196_v19 }
 0x2fe   : > { %1968 = vpow2.f32 %v1267_v27  ;;  %v1271_v27 = vmul.f32 1.442695, %v1195_v24  ;;  %v1192_v7 = vsub.f32 %v2339_v3, %v1101_v10 }
 0x2ff   : > { %1970 = vpow2.f32 %v1269_v30  ;;  %1412 = vadd.xlane.f32.xlu0 %v1411_v28  ;;  %v1147_v30 = vmax.f32 %v2423_v45, %v2427_v47 }
 0x300   : > { %1972 = vpow2.f32 %v1283_v20  ;;  %v1265_v55 = vmul.f32 1.442695, %v1192_v7 }
 0x301   : > { %1974 = vpow2.f32 %v1285_v14  ;;  %v1098_v37 = vpop.xlane.xlu0 %1097 }
 0x302   : > { %v1189_v41 = vsub.f32 %v2333_v63, %v1098_v37  ;;  %v1190_v8 = vsub.f32 %v2335_v0, %v1098_v37  ;;  %1976 = vpow2.f32 %v1279_v11  ;;  %v2575_v63 = vpop.eup %1964  ;;  %v1191_v0 = vsub.f32 %v2337_v2, %v1101_v10 }
 0x303   : > { %1151 = vmax.xlane.f32.xlu0 %v1150_v52  ;;  %1978 = vpow2.f32 %v1281_v18  ;;  %v2581_v53 = vpop.eup %1966 }
 0x304   : > { %v1259_v9 = vmul.f32 1.442695, %v1189_v41  ;;  %v1261_v26 = vmul.f32 1.442695, %v1190_v8  ;;  %v1263_v2 = vmul.f32 1.442695, %v1191_v0 }
 0x305   : > { %v1095_v20 = vpop.xlane.xlu0 %1094 }
 0x306   : > { %1980 = vpow2.f32 %v1259_v9  ;;  %v1187_v3 = vsub.f32 %v2329_v61, %v1095_v20  ;;  %v1188_v18 = vsub.f32 %v2331_v62, %v1095_v20  ;;  %v535_v61 = vld [vmem:[%s2931_s5 + $0x10] sm:$0xff] }
 0x307   : > { %1982 = vpow2.f32 %v1261_v26  ;;  %1409 = vadd.xlane.f32.xlu0 %v1408_v13  ;;  %1887 = vmatmul.mubr.msk.f32.gmra.mxu0 %vm377_vm0, %v535_v61 }
 0x308   : > { %1984 = vpow2.f32 %v1275_v16  ;;  %v1255_v24 = vmul.f32 1.442695, %v1187_v3  ;;  %v1257_v8 = vmul.f32 1.442695, %v1188_v18  ;;  %655 = vmatprep.mubr.f32.mxu0 %v2985_v38 }
 0x309   : > { %1986 = vpow2.f32 %v1277_v35  ;;  %v1092_v34 = vpop.xlane.xlu0 %1091 }
 0x30a   : > { %1988 = vpow2.f32 %v1271_v27  ;;  %v1185_v14 = vsub.f32 %v2325_v59, %v1092_v34  ;;  %v1186_v21 = vsub.f32 %v2327_v60, %v1092_v34  ;;  %v1405_v60 = vadd.f32 %v2581_v53, %v2575_v63 }
 0x30b   : > { %v2585_v28 = vpop.eup %1968  ;;  %1990 = vpow2.f32 %v1273_v6  ;;  %1148 = vmax.xlane.f32.xlu0 %v1147_v30 }
 0x30c   : > { %v2587_v4 = vpop.eup %1970  ;;  %v1251_v10 = vmul.f32 1.442695, %v1185_v14  ;;  %v1253_v5 = vmul.f32 1.442695, %v1186_v21 }
 0x30d   : > { %v2590_v11 = vpop.eup %1972  ;;  %v1089_v37 = vpop.xlane.xlu0 %1088  ;;  %v1390_v59 = vadd.f32 %v2587_v4, %v2585_v28 }
 0x30e   : > { %v2597_v52 = vpop.eup %1974  ;;  %1992 = vpow2.f32 %v1251_v10  ;;  %v1183_v62 = vsub.f32 %v2321_v57, %v1089_v37  ;;  %v1184_v19 = vsub.f32 %v2323_v58, %v1089_v37  ;;  %v536_v57 = vld [vmem:[%s2931_s5 + $0x18] sm:$0xff] }
 0x30f   : > { %1994 = vpow2.f32 %v1253_v5  ;;  %1391 = vadd.xlane.f32.xlu1 %v1390_v59  ;;  %1406 = vadd.xlane.f32.xlu0 %v1405_v60  ;;  %v2604_v41 = vpop.eup %1976  ;;  %v1402_v9 = vadd.f32 %v2597_v52, %v2590_v11 }
 0x310   : > { %1996 = vpow2.f32 %v1263_v2  ;;  %v2610_v26 = vpop.eup %1978  ;;  %v1247_v13 = vmul.f32 1.442695, %v1183_v62  ;;  %1888 = vmatmul.mubr.msk.f32.gmra.mxu0 %vm377_vm0, %v536_v57  ;;  %v1249_v27 = vmul.f32 1.442695, %v1184_v19 }
 0x311   : > { %1998 = vpow2.f32 %v1265_v55  ;;  %v1167_v16 = vpop.xlane.xlu0 %1166  ;;  %v1399_v7 = vadd.f32 %v2610_v26, %v2604_v41  ;;  %1760 = vmatprep.mubr.f32.mxu0 %v2985_v38 }
 0x312   : > { %2000 = vpow2.f32 %v1255_v24  ;;  %v1235_v10 = vsub.f32 %v2465_v43, %v1167_v16  ;;  %v1236_v18 = vsub.f32 %v2467_v44, %v1167_v16 }
 0x313   : > { %v2615_v35 = vpop.eup %1980  ;;  %1403 = vadd.xlane.f32.xlu0 %v1402_v9  ;;  %2002 = vpow2.f32 %v1257_v8 }
 0x314   : > { %v2617_v20 = vpop.eup %1982  ;;  %2004 = vpow2.f32 %v1247_v13  ;;  %v1351_v24 = vmul.f32 1.442695, %v1235_v10  ;;  %v1353_v8 = vmul.f32 1.442695, %v1236_v18 }
 0x315   : > { %v2620_v58 = vpop.eup %1984  ;;  %v2622_v6 = vpop.xlane.xlu0 %1169  ;;  %v1384_v0 = vadd.f32 %v2617_v20, %v2615_v35  ;;  %2006 = vpow2.f32 %v1249_v27 }
 0x316   : > { %v2629_v34 = vpop.eup %1986  ;;  %2008 = vpow2.f32 %v1351_v24 }
 0x317   : > { %v2631_v30 = vpop.eup %1988  ;;  %1385 = vadd.xlane.f32.xlu1 %v1384_v0  ;;  %1400 = vadd.xlane.f32.xlu0 %v1399_v7  ;;  %v1396_v2 = vadd.f32 %v2629_v34, %v2620_v58  ;;  %2010 = vpow2.f32 %v1353_v8 }
 0x318   : > { %v2633_v14 = vpop.eup %1990 }
 0x319   : > { %v1173_v21 = vpop.xlane.xlu0 %1172  ;;  %v1393_v60 = vadd.f32 %v2633_v14, %v2631_v30 }
 0x31a   : > { %v1239_v43 = vsub.f32 %v2477_v54, %v1173_v21  ;;  %v1240_v19 = vsub.f32 %v2479_v56, %v1173_v21 }
 0x31b   : > { %v2637_v3 = vpop.eup %1992  ;;  %1397 = vadd.xlane.f32.xlu0 %v1396_v2 }
 0x31c   : > { %v2640_v5 = vpop.eup %1994  ;;  %v1359_v27 = vmul.f32 1.442695, %v1239_v43  ;;  %v1361_v56 = vmul.f32 1.442695, %v1240_v19 }
 0x31d   : > { %v2642_v55 = vpop.eup %1996  ;;  %v1176_v37 = vpop.xlane.xlu0 %1175  ;;  %v1378_v59 = vadd.f32 %v2640_v5, %v2637_v3 }
 0x31e   : > { %v2649_v61 = vpop.eup %1998  ;;  %v1241_v54 = vsub.f32 %v2483_v31, %v1176_v37  ;;  %v1242_v21 = vsub.f32 %v2485_v40, %v1176_v37  ;;  %v1237_v31 = vsub.f32 %v2471_v48, %v2622_v6  ;;  %v1238_v37 = vsub.f32 %v2473_v50, %v2622_v6  ;;  %v2986_v48 = vld [vmem:[#allocation17_spill] sm:$0xff]  ;;  %v2989_v6 = vld [vmem:[#allocation16_spill] sm:$0xff] }
 0x31f   : > { %1379 = vadd.xlane.f32.xlu1 %v1378_v59  ;;  %1394 = vadd.xlane.f32.xlu0 %v1393_v60  ;;  %v2652_v62 = vpop.eup %2000  ;;  %v1387_v16 = vadd.f32 %v2649_v61, %v2642_v55 }
 0x320   : > { %v2657_v9 = vpop.eup %2002  ;;  %v1363_v60 = vmul.f32 1.442695, %v1241_v54  ;;  %v1365_v43 = vmul.f32 1.442695, %v1242_v21 }
 0x321   : > { %v1179_v44 = vpop.xlane.xlu0 %1178  ;;  %v2662_v2 = vpop.eup %2004  ;;  %v1381_v18 = vadd.f32 %v2657_v9, %v2652_v62 }
 0x322   : > { %v1243_v57 = vsub.f32 %v2489_v1, %v1179_v44  ;;  %v1244_v13 = vsub.f32 %v2491_v33, %v1179_v44  ;;  %v2667_v1 = vpop.eup %2006  ;;  %v1357_v44 = vmul.f32 1.442695, %v1238_v37 }
 0x323   : > { %1388 = vadd.xlane.f32.xlu0 %v1387_v16  ;;  %v2987_v16 = vld [vmem:[#allocation18_spill] sm:$0xff] }
 0x324   : > { %v1367_v0 = vmul.f32 1.442695, %v1243_v57  ;;  %v1369_v7 = vmul.f32 1.442695, %v1244_v13 }
 0x325   : > { %v1182_v10 = vpop.xlane.xlu0 %1181 }
 0x326   : > { %2012 = vpow2.f32 %v1367_v0  ;;  %v1245_v33 = vsub.f32 %v2495_v32, %v1182_v10  ;;  %v1246_v59 = vsub.f32 %v2497_v39, %v1182_v10  ;;  %v1375_v32 = vadd.f32 %v2667_v1, %v2662_v2  ;;  %v2681_v0 = vpop.eup %2008 }
 0x327   : > { %2014 = vpow2.f32 %v1369_v7  ;;  %1382 = vadd.xlane.f32.xlu0 %v1381_v18  ;;  %v1355_v39 = vmul.f32 1.442695, %v1237_v31  ;;  %2990 = vst [vmem:[#allocation17_spill] sm:$0xff] %v2681_v0 }
 0x328   : > { %2016 = vpow2.f32 %v1359_v27  ;;  %v1371_v24 = vmul.f32 1.442695, %v1245_v33  ;;  %v1373_v40 = vmul.f32 1.442695, %v1246_v59  ;;  %v2988_v27 = vld [vmem:[#allocation15_spill] sm:$0xff]  ;;  %v2683_v33 = vpop.eup %2010  ;;  %v2992_v59 = vld [vmem:[#allocation13_spill] sm:$0xff] }
 0x329   : > { %2018 = vpow2.f32 %v1361_v56  ;;  %v1164_v8 = vpop.xlane.xlu0 %1163  ;;  %2991 = vst [vmem:[#allocation18_spill] sm:$0xff] %v2683_v33 }
 0x32a   : > { %2020 = vpow2.f32 %v1371_v24  ;;  %v1233_v19 = vsub.f32 %v2986_v48, %v1164_v8  ;;  %v1234_v57 = vsub.f32 %v2987_v16, %v1164_v8 }
 0x32b   : > { %2022 = vpow2.f32 %v1373_v40  ;;  %1376 = vadd.xlane.f32.xlu0 %v1375_v32 }
 0x32c   : > { %2024 = vpow2.f32 %v1363_v60  ;;  %v1347_v7 = vmul.f32 1.442695, %v1233_v19  ;;  %v1349_v10 = vmul.f32 1.442695, %v1234_v57  ;;  %v2993_v60 = vld [vmem:[#allocation14_spill] sm:$0xff]  ;;  %v2996_v57 = vld [vmem:[#allocation12_spill] sm:$0xff] }
 0x32d   : > { %2026 = vpow2.f32 %v1365_v43  ;;  %v1161_v13 = vpop.xlane.xlu0 %1160 }
 0x32e   : > { %v1231_v50 = vsub.f32 %v2988_v27, %v1161_v13  ;;  %v1232_v54 = vsub.f32 %v2989_v6, %v1161_v13  ;;  %2028 = vpow2.f32 %v1355_v39 }
 0x32f   : > { %2030 = vpow2.f32 %v1357_v44  ;;  %v2995_v44 = vld [vmem:[#allocation11_spill] sm:$0xff] }
 0x330   : > { %v1343_v56 = vmul.f32 1.442695, %v1231_v50  ;;  %v1345_v21 = vmul.f32 1.442695, %v1232_v54 }
 0x331   : > { %v1158_v18 = vpop.xlane.xlu0 %1157 }
 0x332   : > { %2032 = vpow2.f32 %v1343_v56  ;;  %v1229_v31 = vsub.f32 %v2992_v59, %v1158_v18  ;;  %v1230_v24 = vsub.f32 %v2993_v60, %v1158_v18 }
 0x333   : > { %v2687_v40 = vpop.eup %2012  ;;  %2034 = vpow2.f32 %v1345_v21 }
 0x334   : > { %v2689_v37 = vpop.eup %2014  ;;  %2036 = vpow2.f32 %v1347_v7  ;;  %v1339_v43 = vmul.f32 1.442695, %v1229_v31  ;;  %v1341_v32 = vmul.f32 1.442695, %v1230_v24  ;;  %v1453_v31 = vadd.f32 %v2683_v33, %v2681_v0 }
 0x335   : > { %v2691_v8 = vpop.eup %2016  ;;  %2038 = vpow2.f32 %v1349_v10  ;;  %v1155_v39 = vpop.xlane.xlu0 %1154  ;;  %v1465_v48 = vadd.f32 %v2689_v37, %v2687_v40 }
 0x336   : > { %2994 = vst [vmem:[#allocation15_spill] sm:$0xff] %v2691_v8  ;;  %v2695_v19 = vpop.eup %2018  ;;  %v1227_v16 = vsub.f32 %v2995_v44, %v1155_v39  ;;  %v1228_v13 = vsub.f32 %v2996_v57, %v1155_v39  ;;  %2040 = vpow2.f32 %v1339_v43 }
 0x337   : > { %v2699_v27 = vpop.eup %2020  ;;  %1466 = vadd.xlane.f32.xlu0 %v1465_v48  ;;  %2042 = vpow2.f32 %v1341_v32  ;;  %v1459_v21 = vadd.f32 %v2695_v19, %v2691_v8 }
 0x338   : > { %v2701_v50 = vpop.eup %2022  ;;  %v1335_v6 = vmul.f32 1.442695, %v1227_v16  ;;  %v1337_v54 = vmul.f32 1.442695, %v1228_v13 }
 0x339   : > { %v2703_v7 = vpop.eup %2024  ;;  %v1468_v56 = vadd.f32 %v2701_v50, %v2699_v27 }
 0x33a   : > { %v2709_v10 = vpop.eup %2026  ;;  %2044 = vpow2.f32 %v1335_v6 }
 0x33b   : > { %2046 = vpow2.f32 %v1337_v54  ;;  %1469 = vadd.xlane.f32.xlu1 %v1468_v56  ;;  %1460 = vadd.xlane.f32.xlu0 %v1459_v21  ;;  %v2711_v18 = vpop.eup %2028  ;;  %v1462_v59 = vadd.f32 %v2709_v10, %v2703_v7 }
 0x33c   : > { %2997 = vst [vmem:[#allocation16_spill] sm:$0xff] %v2711_v18  ;;  %v2717_v60 = vpop.eup %2030 }
 0x33d   : > { %2998 = vst [vmem:[#allocation13_spill] sm:$0xff] %v2717_v60  ;;  %v1456_v39 = vadd.f32 %v2717_v60, %v2711_v18  ;;  %v3011_v60 = vld [vmem:[#allocation6_spill] sm:$0xff] }
 0x33f   : > { %v2719_v24 = vpop.eup %2032  ;;  %1463 = vadd.xlane.f32.xlu1 %v1462_v59  ;;  %1454 = vadd.xlane.f32.xlu0 %v1453_v31  ;;  %v1146_v31 = vpop.xlane.xlu1 %1145 }
 0x340   : > { %2999 = vst [vmem:[#allocation14_spill] sm:$0xff] %v2719_v24  ;;  %v2721_v43 = vpop.eup %2034 }
 0x341   : > { %3000 = vst [vmem:[#allocation11_spill] sm:$0xff] %v2721_v43  ;;  %v2723_v32 = vpop.eup %2036  ;;  %v1447_v48 = vadd.f32 %v2721_v43, %v2719_v24  ;;  %v3007_v24 = vld [vmem:[#allocation9_spill] sm:$0xff] }
 0x342   : > { %3001 = vst [vmem:[#allocation12_spill] sm:$0xff] %v2723_v32  ;;  %v2729_v44 = vpop.eup %2038  ;;  %v1221_v43 = vsub.f32 %v3007_v24, %v1146_v31 }
 0x343   : > { %3002 = vst [vmem:[#allocation19_spill] sm:$0xff] %v2729_v44  ;;  %1457 = vadd.xlane.f32.xlu1 %v1456_v39  ;;  %1448 = vadd.xlane.f32.xlu0 %v1447_v48  ;;  %v2731_v16 = vpop.eup %2040  ;;  %v1450_v57 = vadd.f32 %v2729_v44, %v2723_v32  ;;  %v1143_v38 = vpop.xlane.xlu1 %1142  ;;  %v3008_v32 = vld [vmem:[#allocation10_spill] sm:$0xff] }
 0x344   : > { %3003 = vst [vmem:[#allocation20_spill] sm:$0xff] %v2731_v16  ;;  %v2735_v13 = vpop.eup %2042  ;;  %v1222_v44 = vsub.f32 %v3008_v32, %v1146_v31  ;;  %v1323_v0 = vmul.f32 1.442695, %v1221_v43 }
 0x345   : > { %3004 = vst [vmem:[#allocation21_spill] sm:$0xff] %v2735_v13  ;;  %v1444_v56 = vadd.f32 %v2735_v13, %v2731_v16 }
 0x346   : > { %v1325_v24 = vmul.f32 1.442695, %v1222_v44 }
 0x347   : > { %v2737_v6 = vpop.eup %2044  ;;  %1451 = vadd.xlane.f32.xlu1 %v1450_v57  ;;  %v1140_v16 = vpop.xlane.xlu1 %1139 }
 0x348   : > { %3005 = vst [vmem:[#allocation22_spill] sm:$0xff] %v2737_v6  ;;  %v2739_v54 = vpop.eup %2046 }
 0x349   : > { %3006 = vst [vmem:[#allocation23_spill] sm:$0xff] %v2739_v54  ;;  %v1441_v21 = vadd.f32 %v2739_v54, %v2737_v6  ;;  %v3009_v6 = vld [vmem:[#allocation7_spill] sm:$0xff] }
 0x34a   : > { %v1219_v54 = vsub.f32 %v3009_v6, %v1143_v38 }
 0x34b   : > { %1445 = vadd.xlane.f32.xlu1 %v1444_v56  ;;  %1442 = vadd.xlane.f32.xlu0 %v1441_v21 }
 0x34c   : > { %v1319_v31 = vmul.f32 1.442695, %v1219_v54 }
 0x37c   : > { %v1416_v59 = vpop.xlane.xlu0 %1415 }
 0x380   : > { %v1419_v39 = vpop.xlane.xlu0 %1418 }
 0x381   : > { %2048 = vrcp.f32 %v1419_v39  ;;  %v3010_v39 = vld [vmem:[#allocation5_spill] sm:$0xff] }
 0x382   : > { %v1217_v33 = vsub.f32 %v3010_v39, %v1140_v16 }
 0x384   : > { %v1422_v48 = vpop.xlane.xlu0 %1421 }
 0x385   : > { %2050 = vrcp.f32 %v1422_v48 }
 0x386   : > { %2052 = vrcp.f32 %v1416_v59  ;;  %v1218_v59 = vsub.f32 %v3011_v60, %v1140_v16 }
 0x388   : > { %v1413_v57 = vpop.xlane.xlu0 %1412 }
 0x389   : > { %2054 = vrcp.f32 %v1413_v57  ;;  %v1315_v57 = vmul.f32 1.442695, %v1217_v33 }
 0x38a   : > { %2056 = vpow2.f32 %v1323_v0  ;;  %v1137_v0 = vpop.xlane.xlu1 %1136 }
 0x38c   : > { %v1152_v13 = vpop.xlane.xlu0 %1151 }
 0x38d   : > { %v1225_v56 = vsub.f32 %v2431_v49, %v1152_v13  ;;  %v1226_v21 = vsub.f32 %v2435_v51, %v1152_v13  ;;  %v3012_v13 = vld [vmem:[#allocation8_spill] sm:$0xff] }
 0x38e   : > { %v2049_v32 = vpop.eup %2048  ;;  %v1220_v6 = vsub.f32 %v3012_v13, %v1143_v38 }
 0x38f   : > { %v1331_v48 = vmul.f32 1.442695, %v1225_v56  ;;  %v1333_v18 = vmul.f32 1.442695, %v1226_v21  ;;  %v1317_v56 = vmul.f32 1.442695, %v1218_v59  ;;  %v1532_v54 = vmul.f32 %v2049_v32, %v2533_v17 }
 0x390   : > { %v1410_v8 = vpop.xlane.xlu0 %1409  ;;  %v1321_v38 = vmul.f32 1.442695, %v1220_v6  ;;  %v3014_v21 = vld [vmem:[#allocation4_spill] sm:$0xff] }
 0x391   : > { %2058 = vpow2.f32 %v1331_v48  ;;  %v1216_v39 = vsub.f32 %v3014_v21, %v1137_v0 }
 0x392   : > { %v2051_v43 = vpop.eup %2050  ;;  %2060 = vpow2.f32 %v1333_v18 }
 0x393   : > { %2062 = vrcp.f32 %v1410_v8  ;;  %v1534_v49 = vmul.f32 %v2051_v43, %v2540_v22  ;;  %v1533_v51 = vmul.f32 %v2051_v43, %v2538_v36  ;;  %v2053_v18 = vpop.eup %2052  ;;  %v3013_v22 = vld [vmem:[#allocation3_spill] sm:$0xff]  ;;  %v1313_v59 = vmul.f32 1.442695, %v1216_v39 }
 0x394   : > { %2064 = vpow2.f32 %v1325_v24  ;;  %v1149_v44 = vpop.xlane.xlu0 %1148  ;;  %v1215_v33 = vsub.f32 %v3013_v22, %v1137_v0 }
 0x395   : > { %v1223_v60 = vsub.f32 %v2423_v45, %v1149_v44  ;;  %v1224_v16 = vsub.f32 %v2427_v47, %v1149_v44  ;;  %1567 = vmatprep.subr.mxu1 %v1534_v49  ;;  %2066 = vpow2.f32 %v1319_v31  ;;  %v1531_v45 = vmul.f32 %v2049_v32, %v2530_v25 }
 0x396   : > { %1568 = vmatpush1.xpose.msra.mxu1 %v1533_v51  ;;  %2068 = vpow2.f32 %v1315_v57  ;;  %v1530_v47 = vmul.f32 %v2053_v18, %v2526_v29  ;;  %v2055_v17 = vpop.eup %2054  ;;  %v1311_v24 = vmul.f32 1.442695, %v1215_v33  ;;  %v1529_v31 = vmul.f32 %v2053_v18, %v2524_v42 }
 0x397   : > { %v1327_v36 = vmul.f32 1.442695, %v1223_v60  ;;  %v1329_v8 = vmul.f32 1.442695, %v1224_v16  ;;  %1569 = vmatprep.subr.mxu1 %v1532_v54  ;;  %2070 = vpow2.f32 %v1317_v56  ;;  %v2763_v57 = vpop.eup %2056  ;;  %v1528_v49 = vmul.f32 %v2055_v17, %v2548_v46 }
 0x398   : > { %v1407_v48 = vpop.xlane.xlu0 %1406  ;;  %v1527_v42 = vmul.f32 %v2055_v17, %v2543_v15  ;;  %v1392_v22 = vpop.xlane.xlu1 %1391 }
 0x399   : > { %2072 = vpow2.f32 %v1327_v36 }
 0x39a   : > { %2074 = vpow2.f32 %v1329_v8  ;;  %1570 = vmatpush1.xpose.msra.mxu1 %v1531_v45 }
 0x39b   : > { %2076 = vrcp.f32 %v1407_v48  ;;  %1571 = vmatprep.subr.mxu1 %v1530_v47 }
 0x39c   : > { %2078 = vpow2.f32 %v1321_v38  ;;  %v1404_v43 = vpop.xlane.xlu0 %1403 }
 0x39d   : > { %2080 = vrcp.f32 %v1404_v43 }
 0x39e   : > { %v2766_v25 = vpop.eup %2058  ;;  %1572 = vmatpush1.xpose.msra.mxu1 %v1529_v31  ;;  %2082 = vpow2.f32 %v1311_v24 }
 0x39f   : > { %v2768_v29 = vpop.eup %2060  ;;  %1573 = vmatprep.subr.mxu1 %v1528_v49  ;;  %2084 = vpow2.f32 %v1313_v59 }
 0x3a0   : > { %v2063_v32 = vpop.eup %2062  ;;  %v1401_v51 = vpop.xlane.xlu0 %1400  ;;  %v1438_v13 = vadd.f32 %v2768_v29, %v2766_v25 }
 0x3a1   : > { %v2773_v6 = vpop.eup %2064  ;;  %2086 = vrcp.f32 %v1401_v51  ;;  %v1526_v46 = vmul.f32 %v2063_v32, %v2567_v23  ;;  %v1525_v16 = vmul.f32 %v2063_v32, %v2562_v12  ;;  %v1386_v43 = vpop.xlane.xlu1 %1385 }
 0x3a2   : > { %1439 = vadd.xlane.f32.xlu1 %v1438_v13  ;;  %1574 = vmatpush1.xpose.msra.mxu1 %v1527_v42  ;;  %v2776_v56 = vpop.eup %2066  ;;  %v1432_v60 = vadd.f32 %v2773_v6, %v2763_v57 }
 0x3a3   : > { %1575 = vmatprep.subr.mxu1 %v1526_v46  ;;  %v2778_v0 = vpop.eup %2068 }
 0x3a4   : > { %v1398_v44 = vpop.xlane.xlu0 %1397  ;;  %v2783_v54 = vpop.eup %2070 }
 0x3a5   : > { %2088 = vrcp.f32 %v1398_v44  ;;  %v1426_v8 = vadd.f32 %v2783_v54, %v2778_v0  ;;  %v537_v44 = vld [vmem:[%s2932_s6] sm:$0xff] }
 0x3a6   : > { %v2785_v15 = vpop.eup %2072  ;;  %1433 = vadd.xlane.f32.xlu1 %v1432_v60  ;;  %1576 = vmatpush1.xpose.msra.mxu1 %v1525_v16 }
 0x3a7   : > { %v2787_v23 = vpop.eup %2074 }
 0x3a8   : > { %v2077_v18 = vpop.eup %2076  ;;  %v1395_v33 = vpop.xlane.xlu0 %1394  ;;  %v1435_v36 = vadd.f32 %v2787_v23, %v2785_v15 }
 0x3a9   : > { %v2793_v38 = vpop.eup %2078  ;;  %2090 = vrcp.f32 %v1395_v33  ;;  %v1524_v12 = vmul.f32 %v2077_v18, %v2581_v53  ;;  %v1523_v21 = vmul.f32 %v2077_v18, %v2575_v63  ;;  %v1380_v46 = vpop.xlane.xlu1 %1379 }
 0x3aa   : > { %v2081_v39 = vpop.eup %2080  ;;  %1436 = vadd.xlane.f32.xlu0 %v1435_v36  ;;  %1427 = vadd.xlane.f32.xlu1 %v1426_v8  ;;  %2092 = vrcp.f32 %v1392_v22  ;;  %v1429_v17 = vadd.f32 %v2793_v38, %v2776_v56 }
 0x3ab   : > { %1577 = vmatprep.subr.mxu1 %v1524_v12  ;;  %v1522_v48 = vmul.f32 %v2081_v39, %v2597_v52  ;;  %v2798_v45 = vpop.eup %2082  ;;  %v1521_v24 = vmul.f32 %v2081_v39, %v2590_v11  ;;  %v538_v12 = vld [vmem:[%s2932_s6 + $0x8] sm:$0xff] }
 0x3ac   : > { %1578 = vmatpush1.xpose.msra.mxu1 %v1523_v21  ;;  %v1389_v47 = vpop.xlane.xlu0 %1388  ;;  %v2803_v59 = vpop.eup %2084 }
 0x3ad   : > { %1579 = vmatprep.subr.mxu1 %v1522_v48  ;;  %2094 = vrcp.f32 %v1389_v47  ;;  %v1423_v52 = vadd.f32 %v2803_v59, %v2798_v45  ;;  %v1663_v48 = vld [vmem:[%s2934_s8 + $0x18] sm:$0xff]  ;;  %v1660_v47 = vld [vmem:[%s2934_s8] sm:$0xff] }
 0x3ae   : > { %v2087_v63 = vpop.eup %2086  ;;  %1430 = vadd.xlane.f32.xlu0 %v1429_v17  ;;  %2096 = vrcp.f32 %v1386_v43 }
 0x3af   : > { %v1520_v53 = vmul.f32 %v2087_v63, %v2610_v26  ;;  %v1519_v31 = vmul.f32 %v2087_v63, %v2604_v41  ;;  %v1662_v63 = vld [vmem:[%s2934_s8 + $0x10] sm:$0xff] }
 0x3b0   : > { %1580 = vmatpush1.xpose.msra.mxu1 %v1521_v24  ;;  %v1383_v32 = vpop.xlane.xlu0 %1382 }
 0x3b1   : > { %1581 = vmatprep.subr.mxu1 %v1520_v53  ;;  %2098 = vrcp.f32 %v1383_v32 }
 0x3b2   : > { %v2089_v49 = vpop.eup %2088  ;;  %1424 = vadd.xlane.f32.xlu0 %v1423_v52  ;;  %2100 = vrcp.f32 %v1380_v46 }
 0x3b3   : > { %v1518_v11 = vmul.f32 %v2089_v49, %v2629_v34  ;;  %v1517_v51 = vmul.f32 %v2089_v49, %v2620_v58 }
 0x3b4   : > { %1582 = vmatpush1.xpose.msra.mxu1 %v1519_v31  ;;  %v1377_v60 = vpop.xlane.xlu0 %1376 }
 0x3b5   : > { %1583 = vmatprep.subr.mxu1 %v1518_v11  ;;  %2102 = vrcp.f32 %v1377_v60 }
 0x3b6   : > { %v2091_v13 = vpop.eup %2090 }
 0x3b7   : > { %v1516_v26 = vmul.f32 %v2091_v13, %v2633_v14  ;;  %v2093_v42 = vpop.eup %2092  ;;  %v1515_v41 = vmul.f32 %v2091_v13, %v2631_v30  ;;  %v539_v14 = vld [vmem:[%s2932_s6 + $0x10] sm:$0xff] }
 0x3b8   : > { %1584 = vmatpush1.xpose.msra.mxu1 %v1517_v51  ;;  %v1514_v34 = vmul.f32 %v2093_v42, %v2587_v4  ;;  %v1513_v16 = vmul.f32 %v2093_v42, %v2585_v28  ;;  %v540_v4 = vld [vmem:[%s2932_s6 + $0x18] sm:$0xff] }
 0x3b9   : > { %1585 = vmatprep.subr.mxu1 %v1516_v26 }
 0x3ba   : > { %v2095_v58 = vpop.eup %2094 }
 0x3bb   : > { %543 = vperm.xlu1 %1943, %v537_v44   ;;  %v1512_v30 = vmul.f32 %v2095_v58, %v2649_v61  ;;  %v2097_v18 = vpop.eup %2096  ;;  %v1511_v22 = vmul.f32 %v2095_v58, %v2642_v55  ;;  %v1661_v61 = vld [vmem:[%s2934_s8 + $0x8] sm:$0xff] }
 0x3bc   : > { %1586 = vmatpush1.xpose.msra.mxu1 %v1515_v41  ;;  %v1510_v33 = vmul.f32 %v2097_v18, %v2617_v20  ;;  %v1509_v21 = vmul.f32 %v2097_v18, %v2615_v35  ;;  %v3015_v44 = vld [vmem:[#allocation15_spill] sm:$0xff] }
 0x3bd   : > { %1587 = vmatprep.subr.mxu1 %v1514_v34 }
 0x3be   : > { %v2099_v36 = vpop.eup %2098 }
 0x3bf   : > { %553 = vperm.xlu1 %1943, %v539_v14   ;;  %v1508_v20 = vmul.f32 %v2099_v36, %v2657_v9  ;;  %v2101_v55 = vpop.eup %2100  ;;  %v1507_v17 = vmul.f32 %v2099_v36, %v2652_v62  ;;  %v3017_v14 = vld [vmem:[#allocation16_spill] sm:$0xff] }
 0x3c0   : > { %1588 = vmatpush1.xpose.msra.mxu1 %v1513_v16  ;;  %v1467_v8 = vpop.xlane.xlu0 %1466  ;;  %v1506_v35 = vmul.f32 %v2101_v55, %v2640_v5  ;;  %v1505_v53 = vmul.f32 %v2101_v55, %v2637_v3  ;;  %v1927_v5 = vld [vmem:[#allocation2] ss:$0 sm:$0xff] }
 0x3c1   : > { %1589 = vmatprep.subr.mxu1 %v1512_v30 }
 0x3c2   : > { %v2103_v9 = vpop.eup %2102 }
 0x3c3   : > { %558 = vperm.xlu1 %1943, %v540_v4   ;;  %v1504_v43 = vmul.f32 %v2103_v9, %v2667_v1  ;;  %v1503_v62 = vmul.f32 %v2103_v9, %v2662_v2  ;;  %v3026_v9 = vld [vmem:[#allocation23_spill] sm:$0xff] }
 0x3c4   : > { %1590 = vmatpush1.xpose.msra.mxu1 %v1511_v22  ;;  %v1470_v28 = vpop.xlane.xlu1 %1469  ;;  %v1461_v24 = vpop.xlane.xlu0 %1460  ;;  %v3020_v22 = vld [vmem:[#allocation19_spill] sm:$0xff] }
 0x3c5   : > { %1591 = vmatprep.subr.mxu1 %v1510_v33  ;;  %2104 = vrcp.f32 %v1470_v28 }
 0x3c6   : > { %2106 = vrcp.f32 %v1467_v8  ;;  %v3021_v8 = vld [vmem:[#allocation12_spill] sm:$0xff] }
 0x3c7   : > { %1671 = vperm.xlu1 %1943, %v1661_v61   ;;  %v3022_v61 = vld [vmem:[#allocation11_spill] sm:$0xff] }
 0x3c8   : > { %1592 = vmatpush1.xpose.msra.mxu1 %v1509_v21  ;;  %548 = vperm.xlu0 %1942, %v538_v12   ;;  %v1464_v39 = vpop.xlane.xlu1 %1463  ;;  %v1455_v11 = vpop.xlane.xlu0 %1454 }
 0x3c9   : > { %1593 = vmatprep.subr.mxu1 %v1508_v20  ;;  %2108 = vrcp.f32 %v1464_v39  ;;  %v3023_v20 = vld [vmem:[#allocation14_spill] sm:$0xff]  ;;  %v3024_v39 = vld [vmem:[#allocation21_spill] sm:$0xff] }
 0x3ca   : > { %2110 = vrcp.f32 %v1461_v24 }
 0x3cb   : > { %1681 = vperm.xlu1 %1943, %v1663_v48  }
 0x3cc   : > { %1594 = vmatpush1.xpose.msra.mxu1 %v1507_v17  ;;  %1666 = vperm.xlu0 %1942, %v1660_v47   ;;  %v1458_v52 = vpop.xlane.xlu1 %1457  ;;  %v1449_v46 = vpop.xlane.xlu0 %1448  ;;  %v3025_v17 = vld [vmem:[#allocation20_spill] sm:$0xff] }
 0x3cd   : > { %1595 = vmatprep.subr.mxu1 %v1506_v35  ;;  %2112 = vrcp.f32 %v1458_v52 }
 0x3ce   : > { %2114 = vrcp.f32 %v1455_v11 }
 0x3d0   : > { %1596 = vmatpush1.xpose.msra.mxu1 %v1505_v53  ;;  %1676 = vperm.xlu0 %1942, %v1662_v63   ;;  %v1452_v13 = vpop.xlane.xlu1 %1451  ;;  %v3027_v63 = vld [vmem:[#allocation22_spill] sm:$0xff] }
 0x3d1   : > { %1597 = vmatprep.subr.mxu1 %v1504_v43  ;;  %2116 = vrcp.f32 %v1452_v13 }
 0x3d2   : > { %v2105_v31 = vpop.eup %2104  ;;  %2118 = vrcp.f32 %v1449_v46 }
 0x3d3   : > { %v2107_v49 = vpop.eup %2106  ;;  %v1566_v32 = vmul.f32 %v2105_v31, %v2701_v50  ;;  %v1565_v3 = vmul.f32 %v2105_v31, %v2699_v27 }
 0x3d4   : > { %1598 = vmatpush1.xpose.msra.mxu1 %v1503_v62  ;;  %1792 = vperm.xlu0 %1942, %v1927_v5   ;;  %v1564_v1 = vmul.f32 %v2107_v49, %v2689_v37  ;;  %v1563_v2 = vmul.f32 %v2107_v49, %v2687_v40  ;;  %v1446_v37 = vpop.xlane.xlu1 %1445  ;;  %v3016_v40 = vld [vmem:[#allocation13_spill] sm:$0xff]  ;;  %v639_v5 = vpop.f32.mrf.mxu0 }
 0x3d5   : > { %1599 = vmatprep.subr.mxu1 %v1566_v32  ;;  %2120 = vrcp.f32 %v1446_v37 }
 0x3d6   : > { %v2109_v51 = vpop.eup %2108  ;;  %v641_v49 = vpop.f32.mrf.mxu0 }
 0x3d7   : > { %v1562_v26 = vmul.f32 %v2109_v51, %v2709_v10  ;;  %v2111_v42 = vpop.eup %2110  ;;  %v1561_v50 = vmul.f32 %v2109_v51, %v2703_v7  ;;  %v1443_v10 = vpop.xlane.xlu0 %1442  ;;  %v3018_v7 = vld [vmem:[#allocation18_spill] sm:$0xff] }
 0x3d8   : > { %1600 = vmatpush2.xpose.msra.mxu1 %v1565_v3  ;;  %v1560_v27 = vmul.f32 %v2111_v42, %v2695_v19  ;;  %v1559_v34 = vmul.f32 %v2111_v42, %v3015_v44  ;;  %2122 = vrcp.f32 %v1443_v10  ;;  %v3019_v19 = vld [vmem:[#allocation17_spill] sm:$0xff]  ;;  %v645_v44 = vpop.f32.mrf.mxu0 }
 0x3d9   : > { %1601 = vmatprep.subr.mxu1 %v1564_v1 }
 0x3da   : > { %v2113_v41 = vpop.eup %2112 }
 0x3db   : > { %v1558_v58 = vmul.f32 %v2113_v41, %v3016_v40  ;;  %v2115_v60 = vpop.eup %2114  ;;  %v1557_v16 = vmul.f32 %v2113_v41, %v3017_v14 }
 0x3dc   : > { %1602 = vmatpush2.xpose.msra.mxu1 %v1563_v2  ;;  %v1556_v30 = vmul.f32 %v2115_v60, %v3018_v7  ;;  %v1555_v4 = vmul.f32 %v2115_v60, %v3019_v19 }
 0x3dd   : > { %1603 = vmatprep.subr.mxu1 %v1562_v26 }
 0x3de   : > { %v2117_v18 = vpop.eup %2116 }
 0x3df   : > { %v1554_v33 = vmul.f32 %v2117_v18, %v3020_v22  ;;  %v2119_v36 = vpop.eup %2118  ;;  %v1553_v28 = vmul.f32 %v2117_v18, %v3021_v8 }
 0x3e0   : > { %1604 = vmatpush2.xpose.msra.mxu1 %v1561_v50  ;;  %v1552_v12 = vmul.f32 %v2119_v36, %v3022_v61  ;;  %v1551_v55 = vmul.f32 %v2119_v36, %v3023_v20  ;;  %v3028_v20 = vmov 0.0  }
 0x3e1   : > { %1605 = vmatprep.subr.mxu1 %v1560_v27 }
 0x3e2   : > { %v2121_v21 = vpop.eup %2120 }
 0x3e3   : > { %v1550_v48 = vmul.f32 %v2121_v21, %v3024_v39  ;;  %v1549_v35 = vmul.f32 %v2121_v21, %v3025_v17  ;;  %v1656_v21 = vld [vmem:[%s2933_s7] sm:$0xff]  ;;  %v1658_v39 = vld [vmem:[%s2933_s7 + $0x10] sm:$0xff] }
 0x3e4   : > { %1606 = vmatpush2.xpose.msra.mxu1 %v1559_v34 }
 0x3e5   : > { %1607 = vmatprep.subr.mxu1 %v1558_v58  ;;  %v2123_v47 = vpop.eup %2122 }
 0x3e6   : > { %v1548_v24 = vmul.f32 %v2123_v47, %v3026_v9  ;;  %v1547_v53 = vmul.f32 %v2123_v47, %v3027_v63 }
 0x3e8   : > { %1608 = vmatpush2.xpose.msra.mxu1 %v1557_v16 }
 0x3e9   : > { %1609 = vmatprep.subr.mxu1 %v1556_v30 }
 0x3ec   : > { %1610 = vmatpush2.xpose.msra.mxu1 %v1555_v4 }
 0x3ed   : > { %1611 = vmatprep.subr.mxu1 %v1554_v33 }
 0x3f0   : > { %1612 = vmatpush2.xpose.msra.mxu1 %v1553_v28 }
 0x3f1   : > { %1613 = vmatprep.subr.mxu1 %v1552_v12 }
 0x3f4   : > { %1614 = vmatpush2.xpose.msra.mxu1 %v1551_v55  ;;  %v1657_v55 = vld [vmem:[%s2933_s7 + $0x8] sm:$0xff] }
 0x3f5   : > { %1615 = vmatprep.subr.mxu1 %v1550_v48  ;;  %v1659_v48 = vld [vmem:[%s2933_s7 + $0x18] sm:$0xff] }
 0x3f8   : > { %1616 = vmatpush2.xpose.msra.mxu1 %v1549_v35 }
 0x3f9   : > { %1617 = vmatprep.subr.mxu1 %v1548_v24 }
 0x3fc   : > { %1618 = vmatpush2.xpose.msra.mxu1 %v1547_v53 }
 0x42b   : > { %v1440_v43 = vpop.xlane.xlu1 %1439 }
 0x42c   : > { %2124 = vrcp.f32 %v1440_v43 }
 0x42f   : > { %v1434_v52 = vpop.xlane.xlu1 %1433 }
 0x430   : > { %2126 = vrcp.f32 %v1434_v52 }
 0x433   : > { %v1437_v62 = vpop.xlane.xlu0 %1436  ;;  %v1428_v31 = vpop.xlane.xlu1 %1427 }
 0x434   : > { %2128 = vrcp.f32 %v1437_v62  ;;  %v2136_v62 = vld [vmem:[%s2237_s23] sm:$0xff] }
 0x437   : > { %v1431_v11 = vpop.xlane.xlu0 %1430  ;;  %v544_v32 = vpop.permute.xlu1 %543 }
 0x438   : > { %2130 = vrcp.f32 %v1431_v11  ;;  %v642_v3 = vadd.f32 %v641_v49, %v544_v32  ;;  %v640_v14 = vadd.f32 %v639_v5, %v544_v32 }
 0x439   : > { %v2125_v1 = vpop.eup %2124  ;;  %2132 = vrcp.f32 %v1428_v31 }
 0x43a   : > { %v1546_v51 = vmul.f32 %v2125_v1, %v2768_v29  ;;  %v1545_v13 = vmul.f32 %v2125_v1, %v2766_v25  ;;  %1631 = vmatprep.mubr.f32.mxu1 %v642_v3  ;;  %v2137_v3 = vld [vmem:[%s2237_s23 + $0x8] sm:$0xff] }
 0x43b   : > { %v1425_v2 = vpop.xlane.xlu0 %1424  ;;  %v554_v16 = vpop.permute.xlu1 %553 }
 0x43c   : > { %1619 = vmatprep.subr.mxu1 %v1546_v51  ;;  %2134 = vrcp.f32 %v1425_v2 }
 0x43d   : > { %1620 = vmatpush2.xpose.msra.mxu1 %v1545_v13  ;;  %v2127_v26 = vpop.eup %2126 }
 0x43e   : > { %v1542_v27 = vmul.f32 %v2127_v26, %v2773_v6  ;;  %v1541_v25 = vmul.f32 %v2127_v26, %v2763_v57  ;;  %v2138_v26 = vld [vmem:[%s2237_s23 + $0x10] sm:$0xff] }
 0x441   : > { %v2129_v42 = vpop.eup %2128 }
 0x442   : > { %v1544_v46 = vmul.f32 %v2129_v42, %v2787_v23  ;;  %v1543_v50 = vmul.f32 %v2129_v42, %v2785_v15  ;;  %v647_v15 = vpop.f32.mrf.mxu0 }
 0x444   : > { %1621 = vmatprep.subr.mxu1 %v1544_v46  ;;  %v651_v58 = vpop.f32.mrf.mxu0 }
 0x445   : > { %v2131_v41 = vpop.eup %2130  ;;  %1622 = vmatpush2.xpose.msra.mxu1 %v1543_v50 }
 0x446   : > { %1623 = vmatprep.subr.mxu1 %v1542_v27  ;;  %v1540_v29 = vmul.f32 %v2131_v41, %v2793_v38  ;;  %v2133_v37 = vpop.eup %2132  ;;  %v1539_v34 = vmul.f32 %v2131_v41, %v2776_v56  ;;  %v549_v38 = vpop.permute.xlu0 %548  ;;  %v2139_v41 = vld [vmem:[%s2237_s23 + $0x18] sm:$0xff] }
 0x447   : > { %v1538_v23 = vmul.f32 %v2133_v37, %v2783_v54  ;;  %v1537_v6 = vmul.f32 %v2133_v37, %v2778_v0  ;;  %v653_v10 = vpop.f32.mrf.mxu0  ;;  %v648_v56 = vadd.f32 %v647_v15, %v549_v38  ;;  %v646_v7 = vadd.f32 %v645_v44, %v549_v38  ;;  %v559_v0 = vpop.permute.xlu1 %558 }
 0x448   : > { %v654_v30 = vadd.f32 %v653_v10, %v554_v16 }
 0x449   : > { %1624 = vmatpush2.xpose.msra.mxu1 %v1541_v25  ;;  %v2135_v40 = vpop.eup %2134  ;;  %v657_v54 = vpop.f32.mrf.mxu0 }
 0x44a   : > { %1625 = vmatprep.subr.mxu1 %v1540_v29  ;;  %v1536_v60 = vmul.f32 %v2135_v40, %v2803_v59  ;;  %v1535_v57 = vmul.f32 %v2135_v40, %v2798_v45  ;;  %v652_v59 = vadd.f32 %v651_v58, %v554_v16  ;;  %v658_v45 = vadd.f32 %v657_v54, %v559_v0  ;;  %v1667_v47 = vpop.permute.xlu0 %1666  ;;  %v2143_v54 = vld [vmem:[%s2237_s23 + $0x38] sm:$0xff] }
 0x44b   : > { %v659_v18 = vpop.f32.mrf.mxu0  ;;  %v1672_v52 = vpop.permute.xlu1 %1671 }
 0x44c   : > { %v660_v19 = vadd.f32 %v659_v18, %v559_v0 }
 0x44d   : > { %1626 = vmatpush2.xpose.msra.mxu1 %v1539_v34 }
 0x44e   : > { %1627 = vmatprep.subr.mxu1 %v1538_v23  ;;  %v1677_v17 = vpop.permute.xlu0 %1676  ;;  %v2140_v23 = vld [vmem:[%s2237_s23 + $0x20] sm:$0xff] }
 0x44f   : > { %v1682_v44 = vpop.permute.xlu1 %1681 }
 0x451   : > { %1628 = vmatpush2.xpose.msra.mxu1 %v1537_v6 }
 0x452   : > { %1629 = vmatprep.subr.mxu1 %v1536_v60  ;;  %v1793_v24 = vpop.permute.xlu0 %1792  ;;  %v2141_v60 = vld [vmem:[%s2237_s23 + $0x28] sm:$0xff] }
 0x455   : > { %1630 = vmatpush2.xpose.msra.mxu1 %v1535_v57 }
 0x458   : > { %1632 = vmatmul.mubr.f32.vlgmr.msra.gmra.mxu1 %v640_v14  ;;  %v2142_v14 = vld [vmem:[%s2237_s23 + $0x30] sm:$0xff] }
 0x459   : > { %1637 = vmatprep.mubr.f32.mxu1 %v648_v56 }
 0x45c   : > { %1638 = vmatmul.mubr.f32.gmra.mxu1 %v646_v7 }
 0x45d   : > { %1643 = vmatprep.mubr.f32.mxu1 %v654_v30 }
 0x460   : > { %1644 = vmatmul.mubr.f32.gmra.mxu1 %v652_v59 }
 0x461   : > { %1649 = vmatprep.mubr.f32.mxu1 %v660_v19 }
 0x464   : > { %1650 = vmatmul.mubr.f32.gmra.mxu1 %v658_v45 }
 0x518   : > { %v1633_v4 = vpop.f32.mrf.mxu1 }
 0x51a   : > { %v1635_v22 = vpop.f32.mrf.mxu1 }
 0x51c   : > { %v1639_v33 = vpop.f32.mrf.mxu1 }
 0x51e   : > { %v1641_v36 = vpop.f32.mrf.mxu1 }
 0x520   : > { %v1645_v8 = vpop.f32.mrf.mxu1 }
 0x522   : > { %v1647_v28 = vpop.f32.mrf.mxu1 }
 0x524   : > { %v1651_v61 = vpop.f32.mrf.mxu1 }
 0x526   : > { %v1653_v12 = vpop.f32.mrf.mxu1 }
 0x527   : > { %1720 = vmatprep.subr.mxu0 %v1653_v12 }
 0x528   : > { %1721 = vmatpush1.msra.mxu0 %v1651_v61 }
 0x529   : > { %1722 = vmatprep.subr.mxu0 %v1647_v28 }
 0x52a   : > { %1723 = vmatpush1.msra.mxu0 %v1645_v8 }
 0x52b   : > { %1724 = vmatprep.subr.mxu0 %v1641_v36 }
 0x52c   : > { %1725 = vmatpush1.msra.mxu0 %v1639_v33 }
 0x52d   : > { %1726 = vmatprep.subr.mxu0 %v1635_v22 }
 0x52e   : > { %1727 = vmatpush1.msra.mxu0 %v1633_v4 }
 0x52f   : > { %1923 = vmatmul.mubr.msk.f32.vlgmr.msra.gmra.mxu0 %vm377_vm0, %v1656_v21 }
 0x530   : > { %1766 = vmatprep.mubr.f32.mxu0 %v3028_v20 }
 0x533   : > { %1924 = vmatmul.mubr.msk.f32.gmra.mxu0 %vm377_vm0, %v1657_v55 }
 0x534   : > { %1772 = vmatprep.mubr.f32.mxu0 %v3028_v20 }
 0x537   : > { %1925 = vmatmul.mubr.msk.f32.gmra.mxu0 %vm377_vm0, %v1658_v39 }
 0x538   : > { %1778 = vmatprep.mubr.f32.mxu0 %v3028_v20 }
 0x53b   : > { %1926 = vmatmul.mubr.msk.f32.gmra.mxu0 %vm377_vm0, %v1659_v48 }
 0x5ef   : > { %v1762_v35 = vpop.f32.mrf.mxu0 }
 0x5f0   : > { %v1763_v9 = vadd.f32 %v1762_v35, %v1667_v47 }
 0x5f1   : > { %v1764_v63 = vpop.f32.mrf.mxu0 }
 0x5f2   : > { %v1795_v53 = vmul.f32 %v1793_v24, %v1763_v9  ;;  %v1765_v43 = vadd.f32 %v1764_v63, %v1667_v47 }
 0x5f3   : > { %v1768_v5 = vpop.f32.mrf.mxu0 }
 0x5f4   : > { %v1803_v31 = vadd.f32 %v2136_v62, %v1795_v53  ;;  %v1796_v49 = vmul.f32 %v1793_v24, %v1765_v43  ;;  %v1769_v11 = vadd.f32 %v1768_v5, %v1672_v52 }
 0x5f5   : > { %v1770_v32 = vpop.f32.mrf.mxu0 }
 0x5f6   : > { %1811 = vst [vmem:[%s2905_s28] sm:$0xff] %v1803_v31  ;;  %v1804_v1 = vadd.f32 %v2137_v3, %v1796_v49  ;;  %v1797_v51 = vmul.f32 %v1793_v24, %v1769_v11  ;;  %v1771_v13 = vadd.f32 %v1770_v32, %v1672_v52 }
 0x5f7   : > { %v1774_v2 = vpop.f32.mrf.mxu0 }
 0x5f8   : > { %1812 = vst [vmem:[%s2905_s28 + $0x8] sm:$0xff] %v1804_v1  ;;  %v1805_v42 = vadd.f32 %v2138_v26, %v1797_v51  ;;  %v1798_v46 = vmul.f32 %v1793_v24, %v1771_v13  ;;  %v1775_v50 = vadd.f32 %v1774_v2, %v1677_v17 }
 0x5f9   : > { %v1776_v27 = vpop.f32.mrf.mxu0 }
 0x5fa   : > { %1813 = vst [vmem:[%s2905_s28 + $0x10] sm:$0xff] %v1805_v42  ;;  %v1806_v25 = vadd.f32 %v2139_v41, %v1798_v46  ;;  %v1799_v29 = vmul.f32 %v1793_v24, %v1775_v50  ;;  %v1777_v37 = vadd.f32 %v1776_v27, %v1677_v17 }
 0x5fb   : > { %v1780_v34 = vpop.f32.mrf.mxu0 }
 0x5fc   : > { %1814 = vst [vmem:[%s2905_s28 + $0x18] sm:$0xff] %v1806_v25  ;;  %v1807_v40 = vadd.f32 %v2140_v23, %v1799_v29  ;;  %v1800_v15 = vmul.f32 %v1793_v24, %v1777_v37  ;;  %v1781_v6 = vadd.f32 %v1780_v34, %v1682_v44 }
 0x5fd   : > { %v1782_v58 = vpop.f32.mrf.mxu0 }
 0x5fe   : > { %1815 = vst [vmem:[%s2905_s28 + $0x20] sm:$0xff] %v1807_v40  ;;  %v1808_v57 = vadd.f32 %v2141_v60, %v1800_v15  ;;  %v1801_v38 = vmul.f32 %v1793_v24, %v1781_v6  ;;  %v1783_v10 = vadd.f32 %v1782_v58, %v1682_v44 }
 0x600   : > { %1816 = vst [vmem:[%s2905_s28 + $0x28] sm:$0xff] %v1808_v57  ;;  %v1809_v56 = vadd.f32 %v2142_v14, %v1801_v38  ;;  %v1802_v16 = vmul.f32 %v1793_v24, %v1783_v10 }
 0x602   : > { %1817 = vst [vmem:[%s2905_s28 + $0x30] sm:$0xff] %v1809_v56  ;;  %v1810_v7 = vadd.f32 %v2143_v54, %v1802_v16 }
 0x604   : > { %1818 = vst [vmem:[%s2905_s28 + $0x38] sm:$0xff] %v1810_v7 }
 0x605 PF: > { %s22_s15 = sadd.s32 1, %s2150_s15  }
 0x606   : > { %p19_p4 = scmp.ge.s32.totalorder %s22_s15, 4  }
 0x608   :  { %21 = sbr.rel (!%p19_p4) target bundleno = 3 (0x3), region = 90 }

</bundles_post_ra>
